<compile_context>
chip_gen: v5e
topology: v5e:2x2
jax: 0.10.0
libtpu: 0.0.40
codegen_flags: <defaults>
</compile_context>

<pallas_src>
import functools

import jax
import jax.numpy as jnp
from jax import lax
from jax.experimental import pallas as pl
from jax.experimental.pallas import tpu as pltpu


# ----------------------------------------------------------------------------
# Kernel: entire network in one pallas_call
# ----------------------------------------------------------------------------
def _net_kernel(layers, T, Bp, *refs):
    """Fused multi-layer LSTM + FC.

    refs layout:
      refs[0]                : x      (T*Bp, Din)  flattened time-major input
      refs[1 + 3*l + 0]      : w_ih_t (Din_l, 4H)  layer-l input->gates (pre-transposed,
                                                   g-gate cols pre-scaled by 2)
      refs[1 + 3*l + 1]      : w_hh_t (H, 4H)      layer-l hidden->gates (pre-transposed,
                                                   g-gate cols pre-scaled by 2)
      refs[1 + 3*l + 2]      : b      (1, 4H)      layer-l combined bias (b_ih + b_hh,
                                                   g-gate cols pre-scaled by 2)
      refs[1 + 3*layers]     : fc_w_t (H, O)
      refs[1 + 3*layers + 1] : fc_b   (1, O)
      refs[-1]               : out    (Bp, O)
    Gate order matches PyTorch: i, f, g, o.
    """
    x_ref = refs[0]
    o_ref = refs[-1]
    w = refs[1:-1]
    fc_w_ref = w[3 * layers]
    fc_b_ref = w[3 * layers + 1]
    H = w[1].shape[0]  # w_hh_t is (H, 4H)

    # Layer-0 input projection hoisted out of the recurrence: one larger MXU
    # matmul (+ bias) with no recurrent dependence.
    gx0 = jnp.dot(x_ref[...], w[0][...],
                  preferred_element_type=jnp.float32) + w[2][...]  # (T*Bp, 4H)
    gxs = [gx0[t * Bp:(t + 1) * Bp, :] for t in range(T)]          # T x (Bp, 4H)

    h = None
    for l in range(layers):
        w_hh_t = w[3 * l + 1][...]                 # (H, 4H)
        last = (l + 1 == layers)
        if not last:
            w_ih_next = w[3 * (l + 1) + 0][...]    # (H, 4H)
            b_next = w[3 * (l + 1) + 2][...]       # (1, 4H)

        h = jnp.zeros((Bp, H), jnp.float32)
        c = jnp.zeros((Bp, H), jnp.float32)
        next_gxs = []
        # Static unroll over the short, fixed sequence length (T=8, H=32).
        for t in range(T):
            if t == 0:
                # h == 0: skip the recurrent matmul and add entirely.
                g = gxs[0]
            else:
                g = gxs[t] + jnp.dot(h, w_hh_t,
                                     preferred_element_type=jnp.float32)
            # Single full-width sigmoid EUP pass. The g-gate columns were
            # pre-scaled by 2 at setup, so tanh(raw) == 2*sigmoid(2*raw) - 1.
            sg = jax.nn.sigmoid(g)
            i_g = sg[:, 0 * H:1 * H]
            f_g = sg[:, 1 * H:2 * H]
            g_g = 2.0 * sg[:, 2 * H:3 * H] - 1.0
            o_g = sg[:, 3 * H:4 * H]
            c = f_g * c + i_g * g_g
            h = o_g * jnp.tanh(c)
            if not last:
                # Interleave the next layer's input projection into this
                # layer's time loop; the small (Bp,H)@(H,4H) matmul hides in
                # MXU slack behind the gate math.
                next_gxs.append(
                    jnp.dot(h, w_ih_next, preferred_element_type=jnp.float32)
                    + b_next)
        if not last:
            gxs = next_gxs

    # FC on the last timestep's hidden state, fused into the same kernel.
    o_ref[...] = (
        jnp.dot(h, fc_w_ref[...], preferred_element_type=jnp.float32)
        + fc_b_ref[...]
    )


# ----------------------------------------------------------------------------
# Wrapper
# ----------------------------------------------------------------------------
@functools.partial(jax.jit, static_argnames=("layers",))
def net_forward(x, kparams, layers):
    """Net.forward: multi-layer LSTM (batch_first) -> last timestep -> Linear.

    x: (B, T, input_dim) float32 (PyTorch batch_first convention).
    kparams: output of prepare_kernel_params (g-gate columns pre-scaled).
    """
    B, T, Din = x.shape
    Bp = ((B + 7) // 8) * 8                      # pad batch to sublane width
    # The transpose/pad/reshape below live in the same jit as the pallas_call
    # and fuse into one tiny copy.
    # TODO(synk): accept x already in time-major (T*Bp, Din) layout from the
    # producer to remove even that copy at very small batch.
    x_tbd = jnp.transpose(x, (1, 0, 2))          # (T, B, Din) time-major
    if Bp != B:
        x_tbd = jnp.pad(x_tbd, ((0, 0), (0, Bp - B), (0, 0)))
    x_flat = x_tbd.reshape(T * Bp, Din)          # flatten time into sublanes

    flat_args = [x_flat]
    for l in range(layers):
        w_ih_t, w_hh_t, b = kparams["lstm"][l]
        flat_args += [w_ih_t, w_hh_t, b]
    flat_args += [kparams["fc_w_t"], kparams["fc_b"]]

    O = kparams["fc_w_t"].shape[1]
    vmem = pl.BlockSpec(memory_space=pltpu.MemorySpace.VMEM)
    out = pl.pallas_call(
        functools.partial(_net_kernel, layers, T, Bp),
        out_shape=jax.ShapeDtypeStruct((Bp, O), jnp.float32),
        in_specs=[vmem] * len(flat_args),
        out_specs=vmem,
    )(*flat_args)
    return out[:B]


def init_params(key, input_dim, hidden_dim, output_dim, layers):
    """PyTorch-style U(-1/sqrt(H), 1/sqrt(H)) init; weights stored pre-transposed.

    Returned params are the *reference* (unscaled) weights:
      lstm[l] = (w_ih.T (Din,4H), w_hh.T (H,4H), (b_ih+b_hh) (1,4H))
    """
    params = {"lstm": []}
    k = 1.0 / jnp.sqrt(hidden_dim)
    for l in range(layers):
        d_in = input_dim if l == 0 else hidden_dim
        key, k1, k2, k3, k4 = jax.random.split(key, 5)
        w_ih = jax.random.uniform(k1, (4 * hidden_dim, d_in), jnp.float32, -k, k)
        w_hh = jax.random.uniform(k2, (4 * hidden_dim, hidden_dim), jnp.float32, -k, k)
        b_ih = jax.random.uniform(k3, (4 * hidden_dim,), jnp.float32, -k, k)
        b_hh = jax.random.uniform(k4, (4 * hidden_dim,), jnp.float32, -k, k)
        params["lstm"].append(
            (w_ih.T, w_hh.T, (b_ih + b_hh).reshape(1, -1))
        )
    key, k5, k6 = jax.random.split(key, 3)
    kf = 1.0 / jnp.sqrt(hidden_dim)
    fc_w = jax.random.uniform(k5, (output_dim, hidden_dim), jnp.float32, -kf, kf)
    params["fc_w_t"] = fc_w.T                               # (H, O)
    params["fc_b"] = jax.random.uniform(k6, (1, output_dim), jnp.float32, -kf, kf)
    return params


def prepare_kernel_params(params, hidden_dim):
    """One-time setup: scale the g-gate (tanh) columns by 2 so the kernel can
    use tanh(x) = 2*sigmoid(2x) - 1 with a single sigmoid EUP pass per step."""
    H = hidden_dim
    scale = jnp.ones((4 * H,), jnp.float32).at[2 * H:3 * H].set(2.0)
    kparams = {"lstm": [], "fc_w_t": params["fc_w_t"], "fc_b": params["fc_b"]}
    for (w_ih_t, w_hh_t, b) in params["lstm"]:
        kparams["lstm"].append((w_ih_t * scale, w_hh_t * scale, b * scale))
    return kparams


# Pure-JAX reference (original math, unscaled params) for a sanity check.
def _ref_forward(x, params, layers):
    h_seq = jnp.transpose(x, (1, 0, 2))
    B = x.shape[0]
    for l in range(layers):
        w_ih_t, w_hh_t, b = params["lstm"][l]
        H = w_hh_t.shape[0]

        def step(carry, x_t):
            h, c = carry
            g = x_t @ w_ih_t + h @ w_hh_t + b
            i = jax.nn.sigmoid(g[:, 0 * H:1 * H])
            f = jax.nn.sigmoid(g[:, 1 * H:2 * H])
            gg = jnp.tanh(g[:, 2 * H:3 * H])
            o = jax.nn.sigmoid(g[:, 3 * H:4 * H])
            c = f * c + i * gg
            h = o * jnp.tanh(c)
            return (h, c), h

        init = (jnp.zeros((B, H), jnp.float32), jnp.zeros((B, H), jnp.float32))
        _, h_seq = lax.scan(step, init, h_seq)
    return h_seq[-1] @ params["fc_w_t"] + params["fc_b"]


if __name__ == "__main__":
    # Small shapes consistent with the module's forward.
    batch, seq_len = 4, 8
    input_dim, hidden_dim, output_dim, layers = 8, 32, 4, 2

    key = jax.random.PRNGKey(0)
    key, kx, kp = jax.random.split(key, 3)
    x = jax.random.normal(kx, (batch, seq_len, input_dim), jnp.float32)
    params = init_params(kp, input_dim, hidden_dim, output_dim, layers)
    kparams = prepare_kernel_params(params, hidden_dim)   # one-time setup

    out = net_forward(x, kparams, layers)
    out = jax.block_until_ready(out)

    ref = _ref_forward(x, params, layers)
    assert out.shape == (batch, output_dim)
    assert jnp.allclose(out, ref, atol=1e-4, rtol=1e-4)

    print("KERNEL_OK")
</pallas_src>

<mosaic_0001>
module attributes {stable_mosaic.version = 11 : i64} {
  func.func @_net_kernel(%arg0: memref<64x8xf32, #tpu.memory_space<vmem>>, %arg1: memref<8x128xf32, #tpu.memory_space<vmem>>, %arg2: memref<32x128xf32, #tpu.memory_space<vmem>>, %arg3: memref<1x128xf32, #tpu.memory_space<vmem>>, %arg4: memref<32x128xf32, #tpu.memory_space<vmem>>, %arg5: memref<32x128xf32, #tpu.memory_space<vmem>>, %arg6: memref<1x128xf32, #tpu.memory_space<vmem>>, %arg7: memref<32x4xf32, #tpu.memory_space<vmem>>, %arg8: memref<1x4xf32, #tpu.memory_space<vmem>>, %arg9: memref<8x4xf32, #tpu.memory_space<vmem>>) attributes {dimension_semantics = [], scalar_prefetch = 0 : i64, scratch_operands = 0 : i64, tpu.core_type = #tpu.core_type<tc>} {
    %c0 = arith.constant 0 : index
    %c0_0 = arith.constant 0 : index
    %0 = vector.load %arg0[%c0, %c0_0] : memref<64x8xf32, #tpu.memory_space<vmem>>, vector<64x8xf32>
    %c0_1 = arith.constant 0 : index
    %c0_2 = arith.constant 0 : index
    %1 = vector.load %arg1[%c0_1, %c0_2] : memref<8x128xf32, #tpu.memory_space<vmem>>, vector<8x128xf32>
    %cst = arith.constant dense<0.000000e+00> : vector<64x128xf32>
    %2 = tpu.matmul %0, %1, %cst {dimension_numbers = #tpu.dot_dimension_numbers<[1], [0], [0], [1], [0, 0, 1, 1], [], []>} : vector<64x8xf32>, vector<8x128xf32>, vector<64x128xf32> -> vector<64x128xf32>
    %c0_3 = arith.constant 0 : index
    %c0_4 = arith.constant 0 : index
    %3 = vector.load %arg3[%c0_3, %c0_4] : memref<1x128xf32, #tpu.memory_space<vmem>>, vector<1x128xf32>
    %4 = vector.broadcast %3 : vector<1x128xf32> to vector<64x128xf32>
    %5 = arith.addf %2, %4 : vector<64x128xf32>
    %6 = vector.extract_strided_slice %5 {offsets = [0, 0], sizes = [8, 128], strides = [1, 1]} : vector<64x128xf32> to vector<8x128xf32>
    %7 = vector.extract_strided_slice %5 {offsets = [8, 0], sizes = [8, 128], strides = [1, 1]} : vector<64x128xf32> to vector<8x128xf32>
    %8 = vector.extract_strided_slice %5 {offsets = [16, 0], sizes = [8, 128], strides = [1, 1]} : vector<64x128xf32> to vector<8x128xf32>
    %9 = vector.extract_strided_slice %5 {offsets = [24, 0], sizes = [8, 128], strides = [1, 1]} : vector<64x128xf32> to vector<8x128xf32>
    %10 = vector.extract_strided_slice %5 {offsets = [32, 0], sizes = [8, 128], strides = [1, 1]} : vector<64x128xf32> to vector<8x128xf32>
    %11 = vector.extract_strided_slice %5 {offsets = [40, 0], sizes = [8, 128], strides = [1, 1]} : vector<64x128xf32> to vector<8x128xf32>
    %12 = vector.extract_strided_slice %5 {offsets = [48, 0], sizes = [8, 128], strides = [1, 1]} : vector<64x128xf32> to vector<8x128xf32>
    %13 = vector.extract_strided_slice %5 {offsets = [56, 0], sizes = [8, 128], strides = [1, 1]} : vector<64x128xf32> to vector<8x128xf32>
    %c0_5 = arith.constant 0 : index
    %c0_6 = arith.constant 0 : index
    %14 = vector.load %arg2[%c0_5, %c0_6] : memref<32x128xf32, #tpu.memory_space<vmem>>, vector<32x128xf32>
    %c0_7 = arith.constant 0 : index
    %c0_8 = arith.constant 0 : index
    %15 = vector.load %arg4[%c0_7, %c0_8] : memref<32x128xf32, #tpu.memory_space<vmem>>, vector<32x128xf32>
    %c0_9 = arith.constant 0 : index
    %c0_10 = arith.constant 0 : index
    %16 = vector.load %arg6[%c0_9, %c0_10] : memref<1x128xf32, #tpu.memory_space<vmem>>, vector<1x128xf32>
    %cst_11 = arith.constant 0.000000e+00 : f32
    %17 = vector.broadcast %cst_11 : f32 to vector<8x32xf32>
    %18 = arith.negf %6 : vector<8x128xf32>
    %19 = math.exp %18 : vector<8x128xf32>
    %cst_12 = arith.constant 1.000000e+00 : f32
    %20 = vector.broadcast %cst_12 : f32 to vector<8x128xf32>
    %21 = arith.addf %20, %19 : vector<8x128xf32>
    %22 = arith.divf %20, %21 : vector<8x128xf32>
    %23 = vector.extract_strided_slice %22 {offsets = [0, 0], sizes = [8, 32], strides = [1, 1]} : vector<8x128xf32> to vector<8x32xf32>
    %24 = vector.extract_strided_slice %22 {offsets = [0, 32], sizes = [8, 32], strides = [1, 1]} : vector<8x128xf32> to vector<8x32xf32>
    %25 = vector.extract_strided_slice %22 {offsets = [0, 64], sizes = [8, 32], strides = [1, 1]} : vector<8x128xf32> to vector<8x32xf32>
    %cst_13 = arith.constant 2.000000e+00 : f32
    %26 = vector.broadcast %cst_13 : f32 to vector<8x32xf32>
    %27 = arith.mulf %26, %25 : vector<8x32xf32>
    %cst_14 = arith.constant 1.000000e+00 : f32
    %28 = vector.broadcast %cst_14 : f32 to vector<8x32xf32>
    %29 = arith.subf %27, %28 : vector<8x32xf32>
    %30 = vector.extract_strided_slice %22 {offsets = [0, 96], sizes = [8, 32], strides = [1, 1]} : vector<8x128xf32> to vector<8x32xf32>
    %31 = arith.mulf %24, %17 : vector<8x32xf32>
    %32 = arith.mulf %23, %29 : vector<8x32xf32>
    %33 = arith.addf %31, %32 : vector<8x32xf32>
    %34 = math.tanh %33 : vector<8x32xf32>
    %35 = arith.mulf %30, %34 : vector<8x32xf32>
    %cst_15 = arith.constant dense<0.000000e+00> : vector<8x128xf32>
    %36 = tpu.matmul %35, %15, %cst_15 {dimension_numbers = #tpu.dot_dimension_numbers<[1], [0], [0], [1], [0, 0, 1, 1], [], []>} : vector<8x32xf32>, vector<32x128xf32>, vector<8x128xf32> -> vector<8x128xf32>
    %37 = vector.broadcast %16 : vector<1x128xf32> to vector<8x128xf32>
    %38 = arith.addf %36, %37 : vector<8x128xf32>
    %cst_16 = arith.constant dense<0.000000e+00> : vector<8x128xf32>
    %39 = tpu.matmul %35, %14, %cst_16 {dimension_numbers = #tpu.dot_dimension_numbers<[1], [0], [0], [1], [0, 0, 1, 1], [], []>} : vector<8x32xf32>, vector<32x128xf32>, vector<8x128xf32> -> vector<8x128xf32>
    %40 = arith.addf %7, %39 : vector<8x128xf32>
    %41 = arith.negf %40 : vector<8x128xf32>
    %42 = math.exp %41 : vector<8x128xf32>
    %cst_17 = arith.constant 1.000000e+00 : f32
    %43 = vector.broadcast %cst_17 : f32 to vector<8x128xf32>
    %44 = arith.addf %43, %42 : vector<8x128xf32>
    %45 = arith.divf %43, %44 : vector<8x128xf32>
    %46 = vector.extract_strided_slice %45 {offsets = [0, 0], sizes = [8, 32], strides = [1, 1]} : vector<8x128xf32> to vector<8x32xf32>
    %47 = vector.extract_strided_slice %45 {offsets = [0, 32], sizes = [8, 32], strides = [1, 1]} : vector<8x128xf32> to vector<8x32xf32>
    %48 = vector.extract_strided_slice %45 {offsets = [0, 64], sizes = [8, 32], strides = [1, 1]} : vector<8x128xf32> to vector<8x32xf32>
    %cst_18 = arith.constant 2.000000e+00 : f32
    %49 = vector.broadcast %cst_18 : f32 to vector<8x32xf32>
    %50 = arith.mulf %49, %48 : vector<8x32xf32>
    %cst_19 = arith.constant 1.000000e+00 : f32
    %51 = vector.broadcast %cst_19 : f32 to vector<8x32xf32>
    %52 = arith.subf %50, %51 : vector<8x32xf32>
    %53 = vector.extract_strided_slice %45 {offsets = [0, 96], sizes = [8, 32], strides = [1, 1]} : vector<8x128xf32> to vector<8x32xf32>
    %54 = arith.mulf %47, %33 : vector<8x32xf32>
    %55 = arith.mulf %46, %52 : vector<8x32xf32>
    %56 = arith.addf %54, %55 : vector<8x32xf32>
    %57 = math.tanh %56 : vector<8x32xf32>
    %58 = arith.mulf %53, %57 : vector<8x32xf32>
    %cst_20 = arith.constant dense<0.000000e+00> : vector<8x128xf32>
    %59 = tpu.matmul %58, %15, %cst_20 {dimension_numbers = #tpu.dot_dimension_numbers<[1], [0], [0], [1], [0, 0, 1, 1], [], []>} : vector<8x32xf32>, vector<32x128xf32>, vector<8x128xf32> -> vector<8x128xf32>
    %60 = vector.broadcast %16 : vector<1x128xf32> to vector<8x128xf32>
    %61 = arith.addf %59, %60 : vector<8x128xf32>
    %cst_21 = arith.constant dense<0.000000e+00> : vector<8x128xf32>
    %62 = tpu.matmul %58, %14, %cst_21 {dimension_numbers = #tpu.dot_dimension_numbers<[1], [0], [0], [1], [0, 0, 1, 1], [], []>} : vector<8x32xf32>, vector<32x128xf32>, vector<8x128xf32> -> vector<8x128xf32>
    %63 = arith.addf %8, %62 : vector<8x128xf32>
    %64 = arith.negf %63 : vector<8x128xf32>
    %65 = math.exp %64 : vector<8x128xf32>
    %cst_22 = arith.constant 1.000000e+00 : f32
    %66 = vector.broadcast %cst_22 : f32 to vector<8x128xf32>
    %67 = arith.addf %66, %65 : vector<8x128xf32>
    %68 = arith.divf %66, %67 : vector<8x128xf32>
    %69 = vector.extract_strided_slice %68 {offsets = [0, 0], sizes = [8, 32], strides = [1, 1]} : vector<8x128xf32> to vector<8x32xf32>
    %70 = vector.extract_strided_slice %68 {offsets = [0, 32], sizes = [8, 32], strides = [1, 1]} : vector<8x128xf32> to vector<8x32xf32>
    %71 = vector.extract_strided_slice %68 {offsets = [0, 64], sizes = [8, 32], strides = [1, 1]} : vector<8x128xf32> to vector<8x32xf32>
    %cst_23 = arith.constant 2.000000e+00 : f32
    %72 = vector.broadcast %cst_23 : f32 to vector<8x32xf32>
    %73 = arith.mulf %72, %71 : vector<8x32xf32>
    %cst_24 = arith.constant 1.000000e+00 : f32
    %74 = vector.broadcast %cst_24 : f32 to vector<8x32xf32>
    %75 = arith.subf %73, %74 : vector<8x32xf32>
    %76 = vector.extract_strided_slice %68 {offsets = [0, 96], sizes = [8, 32], strides = [1, 1]} : vector<8x128xf32> to vector<8x32xf32>
    %77 = arith.mulf %70, %56 : vector<8x32xf32>
    %78 = arith.mulf %69, %75 : vector<8x32xf32>
    %79 = arith.addf %77, %78 : vector<8x32xf32>
    %80 = math.tanh %79 : vector<8x32xf32>
    %81 = arith.mulf %76, %80 : vector<8x32xf32>
    %cst_25 = arith.constant dense<0.000000e+00> : vector<8x128xf32>
    %82 = tpu.matmul %81, %15, %cst_25 {dimension_numbers = #tpu.dot_dimension_numbers<[1], [0], [0], [1], [0, 0, 1, 1], [], []>} : vector<8x32xf32>, vector<32x128xf32>, vector<8x128xf32> -> vector<8x128xf32>
    %83 = vector.broadcast %16 : vector<1x128xf32> to vector<8x128xf32>
    %84 = arith.addf %82, %83 : vector<8x128xf32>
    %cst_26 = arith.constant dense<0.000000e+00> : vector<8x128xf32>
    %85 = tpu.matmul %81, %14, %cst_26 {dimension_numbers = #tpu.dot_dimension_numbers<[1], [0], [0], [1], [0, 0, 1, 1], [], []>} : vector<8x32xf32>, vector<32x128xf32>, vector<8x128xf32> -> vector<8x128xf32>
    %86 = arith.addf %9, %85 : vector<8x128xf32>
    %87 = arith.negf %86 : vector<8x128xf32>
    %88 = math.exp %87 : vector<8x128xf32>
    %cst_27 = arith.constant 1.000000e+00 : f32
    %89 = vector.broadcast %cst_27 : f32 to vector<8x128xf32>
    %90 = arith.addf %89, %88 : vector<8x128xf32>
    %91 = arith.divf %89, %90 : vector<8x128xf32>
    %92 = vector.extract_strided_slice %91 {offsets = [0, 0], sizes = [8, 32], strides = [1, 1]} : vector<8x128xf32> to vector<8x32xf32>
    %93 = vector.extract_strided_slice %91 {offsets = [0, 32], sizes = [8, 32], strides = [1, 1]} : vector<8x128xf32> to vector<8x32xf32>
    %94 = vector.extract_strided_slice %91 {offsets = [0, 64], sizes = [8, 32], strides = [1, 1]} : vector<8x128xf32> to vector<8x32xf32>
    %cst_28 = arith.constant 2.000000e+00 : f32
    %95 = vector.broadcast %cst_28 : f32 to vector<8x32xf32>
    %96 = arith.mulf %95, %94 : vector<8x32xf32>
    %cst_29 = arith.constant 1.000000e+00 : f32
    %97 = vector.broadcast %cst_29 : f32 to vector<8x32xf32>
    %98 = arith.subf %96, %97 : vector<8x32xf32>
    %99 = vector.extract_strided_slice %91 {offsets = [0, 96], sizes = [8, 32], strides = [1, 1]} : vector<8x128xf32> to vector<8x32xf32>
    %100 = arith.mulf %93, %79 : vector<8x32xf32>
    %101 = arith.mulf %92, %98 : vector<8x32xf32>
    %102 = arith.addf %100, %101 : vector<8x32xf32>
    %103 = math.tanh %102 : vector<8x32xf32>
    %104 = arith.mulf %99, %103 : vector<8x32xf32>
    %cst_30 = arith.constant dense<0.000000e+00> : vector<8x128xf32>
    %105 = tpu.matmul %104, %15, %cst_30 {dimension_numbers = #tpu.dot_dimension_numbers<[1], [0], [0], [1], [0, 0, 1, 1], [], []>} : vector<8x32xf32>, vector<32x128xf32>, vector<8x128xf32> -> vector<8x128xf32>
    %106 = vector.broadcast %16 : vector<1x128xf32> to vector<8x128xf32>
    %107 = arith.addf %105, %106 : vector<8x128xf32>
    %cst_31 = arith.constant dense<0.000000e+00> : vector<8x128xf32>
    %108 = tpu.matmul %104, %14, %cst_31 {dimension_numbers = #tpu.dot_dimension_numbers<[1], [0], [0], [1], [0, 0, 1, 1], [], []>} : vector<8x32xf32>, vector<32x128xf32>, vector<8x128xf32> -> vector<8x128xf32>
    %109 = arith.addf %10, %108 : vector<8x128xf32>
    %110 = arith.negf %109 : vector<8x128xf32>
    %111 = math.exp %110 : vector<8x128xf32>
    %cst_32 = arith.constant 1.000000e+00 : f32
    %112 = vector.broadcast %cst_32 : f32 to vector<8x128xf32>
    %113 = arith.addf %112, %111 : vector<8x128xf32>
    %114 = arith.divf %112, %113 : vector<8x128xf32>
    %115 = vector.extract_strided_slice %114 {offsets = [0, 0], sizes = [8, 32], strides = [1, 1]} : vector<8x128xf32> to vector<8x32xf32>
    %116 = vector.extract_strided_slice %114 {offsets = [0, 32], sizes = [8, 32], strides = [1, 1]} : vector<8x128xf32> to vector<8x32xf32>
    %117 = vector.extract_strided_slice %114 {offsets = [0, 64], sizes = [8, 32], strides = [1, 1]} : vector<8x128xf32> to vector<8x32xf32>
    %cst_33 = arith.constant 2.000000e+00 : f32
    %118 = vector.broadcast %cst_33 : f32 to vector<8x32xf32>
    %119 = arith.mulf %118, %117 : vector<8x32xf32>
    %cst_34 = arith.constant 1.000000e+00 : f32
    %120 = vector.broadcast %cst_34 : f32 to vector<8x32xf32>
    %121 = arith.subf %119, %120 : vector<8x32xf32>
    %122 = vector.extract_strided_slice %114 {offsets = [0, 96], sizes = [8, 32], strides = [1, 1]} : vector<8x128xf32> to vector<8x32xf32>
    %123 = arith.mulf %116, %102 : vector<8x32xf32>
    %124 = arith.mulf %115, %121 : vector<8x32xf32>
    %125 = arith.addf %123, %124 : vector<8x32xf32>
    %126 = math.tanh %125 : vector<8x32xf32>
    %127 = arith.mulf %122, %126 : vector<8x32xf32>
    %cst_35 = arith.constant dense<0.000000e+00> : vector<8x128xf32>
    %128 = tpu.matmul %127, %15, %cst_35 {dimension_numbers = #tpu.dot_dimension_numbers<[1], [0], [0], [1], [0, 0, 1, 1], [], []>} : vector<8x32xf32>, vector<32x128xf32>, vector<8x128xf32> -> vector<8x128xf32>
    %129 = vector.broadcast %16 : vector<1x128xf32> to vector<8x128xf32>
    %130 = arith.addf %128, %129 : vector<8x128xf32>
    %cst_36 = arith.constant dense<0.000000e+00> : vector<8x128xf32>
    %131 = tpu.matmul %127, %14, %cst_36 {dimension_numbers = #tpu.dot_dimension_numbers<[1], [0], [0], [1], [0, 0, 1, 1], [], []>} : vector<8x32xf32>, vector<32x128xf32>, vector<8x128xf32> -> vector<8x128xf32>
    %132 = arith.addf %11, %131 : vector<8x128xf32>
    %133 = arith.negf %132 : vector<8x128xf32>
    %134 = math.exp %133 : vector<8x128xf32>
    %cst_37 = arith.constant 1.000000e+00 : f32
    %135 = vector.broadcast %cst_37 : f32 to vector<8x128xf32>
    %136 = arith.addf %135, %134 : vector<8x128xf32>
    %137 = arith.divf %135, %136 : vector<8x128xf32>
    %138 = vector.extract_strided_slice %137 {offsets = [0, 0], sizes = [8, 32], strides = [1, 1]} : vector<8x128xf32> to vector<8x32xf32>
    %139 = vector.extract_strided_slice %137 {offsets = [0, 32], sizes = [8, 32], strides = [1, 1]} : vector<8x128xf32> to vector<8x32xf32>
    %140 = vector.extract_strided_slice %137 {offsets = [0, 64], sizes = [8, 32], strides = [1, 1]} : vector<8x128xf32> to vector<8x32xf32>
    %cst_38 = arith.constant 2.000000e+00 : f32
    %141 = vector.broadcast %cst_38 : f32 to vector<8x32xf32>
    %142 = arith.mulf %141, %140 : vector<8x32xf32>
    %cst_39 = arith.constant 1.000000e+00 : f32
    %143 = vector.broadcast %cst_39 : f32 to vector<8x32xf32>
    %144 = arith.subf %142, %143 : vector<8x32xf32>
    %145 = vector.extract_strided_slice %137 {offsets = [0, 96], sizes = [8, 32], strides = [1, 1]} : vector<8x128xf32> to vector<8x32xf32>
    %146 = arith.mulf %139, %125 : vector<8x32xf32>
    %147 = arith.mulf %138, %144 : vector<8x32xf32>
    %148 = arith.addf %146, %147 : vector<8x32xf32>
    %149 = math.tanh %148 : vector<8x32xf32>
    %150 = arith.mulf %145, %149 : vector<8x32xf32>
    %cst_40 = arith.constant dense<0.000000e+00> : vector<8x128xf32>
    %151 = tpu.matmul %150, %15, %cst_40 {dimension_numbers = #tpu.dot_dimension_numbers<[1], [0], [0], [1], [0, 0, 1, 1], [], []>} : vector<8x32xf32>, vector<32x128xf32>, vector<8x128xf32> -> vector<8x128xf32>
    %152 = vector.broadcast %16 : vector<1x128xf32> to vector<8x128xf32>
    %153 = arith.addf %151, %152 : vector<8x128xf32>
    %cst_41 = arith.constant dense<0.000000e+00> : vector<8x128xf32>
    %154 = tpu.matmul %150, %14, %cst_41 {dimension_numbers = #tpu.dot_dimension_numbers<[1], [0], [0], [1], [0, 0, 1, 1], [], []>} : vector<8x32xf32>, vector<32x128xf32>, vector<8x128xf32> -> vector<8x128xf32>
    %155 = arith.addf %12, %154 : vector<8x128xf32>
    %156 = arith.negf %155 : vector<8x128xf32>
    %157 = math.exp %156 : vector<8x128xf32>
    %cst_42 = arith.constant 1.000000e+00 : f32
    %158 = vector.broadcast %cst_42 : f32 to vector<8x128xf32>
    %159 = arith.addf %158, %157 : vector<8x128xf32>
    %160 = arith.divf %158, %159 : vector<8x128xf32>
    %161 = vector.extract_strided_slice %160 {offsets = [0, 0], sizes = [8, 32], strides = [1, 1]} : vector<8x128xf32> to vector<8x32xf32>
    %162 = vector.extract_strided_slice %160 {offsets = [0, 32], sizes = [8, 32], strides = [1, 1]} : vector<8x128xf32> to vector<8x32xf32>
    %163 = vector.extract_strided_slice %160 {offsets = [0, 64], sizes = [8, 32], strides = [1, 1]} : vector<8x128xf32> to vector<8x32xf32>
    %cst_43 = arith.constant 2.000000e+00 : f32
    %164 = vector.broadcast %cst_43 : f32 to vector<8x32xf32>
    %165 = arith.mulf %164, %163 : vector<8x32xf32>
    %cst_44 = arith.constant 1.000000e+00 : f32
    %166 = vector.broadcast %cst_44 : f32 to vector<8x32xf32>
    %167 = arith.subf %165, %166 : vector<8x32xf32>
    %168 = vector.extract_strided_slice %160 {offsets = [0, 96], sizes = [8, 32], strides = [1, 1]} : vector<8x128xf32> to vector<8x32xf32>
    %169 = arith.mulf %162, %148 : vector<8x32xf32>
    %170 = arith.mulf %161, %167 : vector<8x32xf32>
    %171 = arith.addf %169, %170 : vector<8x32xf32>
    %172 = math.tanh %171 : vector<8x32xf32>
    %173 = arith.mulf %168, %172 : vector<8x32xf32>
    %cst_45 = arith.constant dense<0.000000e+00> : vector<8x128xf32>
    %174 = tpu.matmul %173, %15, %cst_45 {dimension_numbers = #tpu.dot_dimension_numbers<[1], [0], [0], [1], [0, 0, 1, 1], [], []>} : vector<8x32xf32>, vector<32x128xf32>, vector<8x128xf32> -> vector<8x128xf32>
    %175 = vector.broadcast %16 : vector<1x128xf32> to vector<8x128xf32>
    %176 = arith.addf %174, %175 : vector<8x128xf32>
    %cst_46 = arith.constant dense<0.000000e+00> : vector<8x128xf32>
    %177 = tpu.matmul %173, %14, %cst_46 {dimension_numbers = #tpu.dot_dimension_numbers<[1], [0], [0], [1], [0, 0, 1, 1], [], []>} : vector<8x32xf32>, vector<32x128xf32>, vector<8x128xf32> -> vector<8x128xf32>
    %178 = arith.addf %13, %177 : vector<8x128xf32>
    %179 = arith.negf %178 : vector<8x128xf32>
    %180 = math.exp %179 : vector<8x128xf32>
    %cst_47 = arith.constant 1.000000e+00 : f32
    %181 = vector.broadcast %cst_47 : f32 to vector<8x128xf32>
    %182 = arith.addf %181, %180 : vector<8x128xf32>
    %183 = arith.divf %181, %182 : vector<8x128xf32>
    %184 = vector.extract_strided_slice %183 {offsets = [0, 0], sizes = [8, 32], strides = [1, 1]} : vector<8x128xf32> to vector<8x32xf32>
    %185 = vector.extract_strided_slice %183 {offsets = [0, 32], sizes = [8, 32], strides = [1, 1]} : vector<8x128xf32> to vector<8x32xf32>
    %186 = vector.extract_strided_slice %183 {offsets = [0, 64], sizes = [8, 32], strides = [1, 1]} : vector<8x128xf32> to vector<8x32xf32>
    %cst_48 = arith.constant 2.000000e+00 : f32
    %187 = vector.broadcast %cst_48 : f32 to vector<8x32xf32>
    %188 = arith.mulf %187, %186 : vector<8x32xf32>
    %cst_49 = arith.constant 1.000000e+00 : f32
    %189 = vector.broadcast %cst_49 : f32 to vector<8x32xf32>
    %190 = arith.subf %188, %189 : vector<8x32xf32>
    %191 = vector.extract_strided_slice %183 {offsets = [0, 96], sizes = [8, 32], strides = [1, 1]} : vector<8x128xf32> to vector<8x32xf32>
    %192 = arith.mulf %185, %171 : vector<8x32xf32>
    %193 = arith.mulf %184, %190 : vector<8x32xf32>
    %194 = arith.addf %192, %193 : vector<8x32xf32>
    %195 = math.tanh %194 : vector<8x32xf32>
    %196 = arith.mulf %191, %195 : vector<8x32xf32>
    %cst_50 = arith.constant dense<0.000000e+00> : vector<8x128xf32>
    %197 = tpu.matmul %196, %15, %cst_50 {dimension_numbers = #tpu.dot_dimension_numbers<[1], [0], [0], [1], [0, 0, 1, 1], [], []>} : vector<8x32xf32>, vector<32x128xf32>, vector<8x128xf32> -> vector<8x128xf32>
    %198 = vector.broadcast %16 : vector<1x128xf32> to vector<8x128xf32>
    %199 = arith.addf %197, %198 : vector<8x128xf32>
    %c0_51 = arith.constant 0 : index
    %c0_52 = arith.constant 0 : index
    %200 = vector.load %arg5[%c0_51, %c0_52] : memref<32x128xf32, #tpu.memory_space<vmem>>, vector<32x128xf32>
    %cst_53 = arith.constant 0.000000e+00 : f32
    %201 = vector.broadcast %cst_53 : f32 to vector<8x32xf32>
    %202 = arith.negf %38 : vector<8x128xf32>
    %203 = math.exp %202 : vector<8x128xf32>
    %cst_54 = arith.constant 1.000000e+00 : f32
    %204 = vector.broadcast %cst_54 : f32 to vector<8x128xf32>
    %205 = arith.addf %204, %203 : vector<8x128xf32>
    %206 = arith.divf %204, %205 : vector<8x128xf32>
    %207 = vector.extract_strided_slice %206 {offsets = [0, 0], sizes = [8, 32], strides = [1, 1]} : vector<8x128xf32> to vector<8x32xf32>
    %208 = vector.extract_strided_slice %206 {offsets = [0, 32], sizes = [8, 32], strides = [1, 1]} : vector<8x128xf32> to vector<8x32xf32>
    %209 = vector.extract_strided_slice %206 {offsets = [0, 64], sizes = [8, 32], strides = [1, 1]} : vector<8x128xf32> to vector<8x32xf32>
    %cst_55 = arith.constant 2.000000e+00 : f32
    %210 = vector.broadcast %cst_55 : f32 to vector<8x32xf32>
    %211 = arith.mulf %210, %209 : vector<8x32xf32>
    %cst_56 = arith.constant 1.000000e+00 : f32
    %212 = vector.broadcast %cst_56 : f32 to vector<8x32xf32>
    %213 = arith.subf %211, %212 : vector<8x32xf32>
    %214 = vector.extract_strided_slice %206 {offsets = [0, 96], sizes = [8, 32], strides = [1, 1]} : vector<8x128xf32> to vector<8x32xf32>
    %215 = arith.mulf %208, %201 : vector<8x32xf32>
    %216 = arith.mulf %207, %213 : vector<8x32xf32>
    %217 = arith.addf %215, %216 : vector<8x32xf32>
    %218 = math.tanh %217 : vector<8x32xf32>
    %219 = arith.mulf %214, %218 : vector<8x32xf32>
    %cst_57 = arith.constant dense<0.000000e+00> : vector<8x128xf32>
    %220 = tpu.matmul %219, %200, %cst_57 {dimension_numbers = #tpu.dot_dimension_numbers<[1], [0], [0], [1], [0, 0, 1, 1], [], []>} : vector<8x32xf32>, vector<32x128xf32>, vector<8x128xf32> -> vector<8x128xf32>
    %221 = arith.addf %61, %220 : vector<8x128xf32>
    %222 = arith.negf %221 : vector<8x128xf32>
    %223 = math.exp %222 : vector<8x128xf32>
    %cst_58 = arith.constant 1.000000e+00 : f32
    %224 = vector.broadcast %cst_58 : f32 to vector<8x128xf32>
    %225 = arith.addf %224, %223 : vector<8x128xf32>
    %226 = arith.divf %224, %225 : vector<8x128xf32>
    %227 = vector.extract_strided_slice %226 {offsets = [0, 0], sizes = [8, 32], strides = [1, 1]} : vector<8x128xf32> to vector<8x32xf32>
    %228 = vector.extract_strided_slice %226 {offsets = [0, 32], sizes = [8, 32], strides = [1, 1]} : vector<8x128xf32> to vector<8x32xf32>
    %229 = vector.extract_strided_slice %226 {offsets = [0, 64], sizes = [8, 32], strides = [1, 1]} : vector<8x128xf32> to vector<8x32xf32>
    %cst_59 = arith.constant 2.000000e+00 : f32
    %230 = vector.broadcast %cst_59 : f32 to vector<8x32xf32>
    %231 = arith.mulf %230, %229 : vector<8x32xf32>
    %cst_60 = arith.constant 1.000000e+00 : f32
    %232 = vector.broadcast %cst_60 : f32 to vector<8x32xf32>
    %233 = arith.subf %231, %232 : vector<8x32xf32>
    %234 = vector.extract_strided_slice %226 {offsets = [0, 96], sizes = [8, 32], strides = [1, 1]} : vector<8x128xf32> to vector<8x32xf32>
    %235 = arith.mulf %228, %217 : vector<8x32xf32>
    %236 = arith.mulf %227, %233 : vector<8x32xf32>
    %237 = arith.addf %235, %236 : vector<8x32xf32>
    %238 = math.tanh %237 : vector<8x32xf32>
    %239 = arith.mulf %234, %238 : vector<8x32xf32>
    %cst_61 = arith.constant dense<0.000000e+00> : vector<8x128xf32>
    %240 = tpu.matmul %239, %200, %cst_61 {dimension_numbers = #tpu.dot_dimension_numbers<[1], [0], [0], [1], [0, 0, 1, 1], [], []>} : vector<8x32xf32>, vector<32x128xf32>, vector<8x128xf32> -> vector<8x128xf32>
    %241 = arith.addf %84, %240 : vector<8x128xf32>
    %242 = arith.negf %241 : vector<8x128xf32>
    %243 = math.exp %242 : vector<8x128xf32>
    %cst_62 = arith.constant 1.000000e+00 : f32
    %244 = vector.broadcast %cst_62 : f32 to vector<8x128xf32>
    %245 = arith.addf %244, %243 : vector<8x128xf32>
    %246 = arith.divf %244, %245 : vector<8x128xf32>
    %247 = vector.extract_strided_slice %246 {offsets = [0, 0], sizes = [8, 32], strides = [1, 1]} : vector<8x128xf32> to vector<8x32xf32>
    %248 = vector.extract_strided_slice %246 {offsets = [0, 32], sizes = [8, 32], strides = [1, 1]} : vector<8x128xf32> to vector<8x32xf32>
    %249 = vector.extract_strided_slice %246 {offsets = [0, 64], sizes = [8, 32], strides = [1, 1]} : vector<8x128xf32> to vector<8x32xf32>
    %cst_63 = arith.constant 2.000000e+00 : f32
    %250 = vector.broadcast %cst_63 : f32 to vector<8x32xf32>
    %251 = arith.mulf %250, %249 : vector<8x32xf32>
    %cst_64 = arith.constant 1.000000e+00 : f32
    %252 = vector.broadcast %cst_64 : f32 to vector<8x32xf32>
    %253 = arith.subf %251, %252 : vector<8x32xf32>
    %254 = vector.extract_strided_slice %246 {offsets = [0, 96], sizes = [8, 32], strides = [1, 1]} : vector<8x128xf32> to vector<8x32xf32>
    %255 = arith.mulf %248, %237 : vector<8x32xf32>
    %256 = arith.mulf %247, %253 : vector<8x32xf32>
    %257 = arith.addf %255, %256 : vector<8x32xf32>
    %258 = math.tanh %257 : vector<8x32xf32>
    %259 = arith.mulf %254, %258 : vector<8x32xf32>
    %cst_65 = arith.constant dense<0.000000e+00> : vector<8x128xf32>
    %260 = tpu.matmul %259, %200, %cst_65 {dimension_numbers = #tpu.dot_dimension_numbers<[1], [0], [0], [1], [0, 0, 1, 1], [], []>} : vector<8x32xf32>, vector<32x128xf32>, vector<8x128xf32> -> vector<8x128xf32>
    %261 = arith.addf %107, %260 : vector<8x128xf32>
    %262 = arith.negf %261 : vector<8x128xf32>
    %263 = math.exp %262 : vector<8x128xf32>
    %cst_66 = arith.constant 1.000000e+00 : f32
    %264 = vector.broadcast %cst_66 : f32 to vector<8x128xf32>
    %265 = arith.addf %264, %263 : vector<8x128xf32>
    %266 = arith.divf %264, %265 : vector<8x128xf32>
    %267 = vector.extract_strided_slice %266 {offsets = [0, 0], sizes = [8, 32], strides = [1, 1]} : vector<8x128xf32> to vector<8x32xf32>
    %268 = vector.extract_strided_slice %266 {offsets = [0, 32], sizes = [8, 32], strides = [1, 1]} : vector<8x128xf32> to vector<8x32xf32>
    %269 = vector.extract_strided_slice %266 {offsets = [0, 64], sizes = [8, 32], strides = [1, 1]} : vector<8x128xf32> to vector<8x32xf32>
    %cst_67 = arith.constant 2.000000e+00 : f32
    %270 = vector.broadcast %cst_67 : f32 to vector<8x32xf32>
    %271 = arith.mulf %270, %269 : vector<8x32xf32>
    %cst_68 = arith.constant 1.000000e+00 : f32
    %272 = vector.broadcast %cst_68 : f32 to vector<8x32xf32>
    %273 = arith.subf %271, %272 : vector<8x32xf32>
    %274 = vector.extract_strided_slice %266 {offsets = [0, 96], sizes = [8, 32], strides = [1, 1]} : vector<8x128xf32> to vector<8x32xf32>
    %275 = arith.mulf %268, %257 : vector<8x32xf32>
    %276 = arith.mulf %267, %273 : vector<8x32xf32>
    %277 = arith.addf %275, %276 : vector<8x32xf32>
    %278 = math.tanh %277 : vector<8x32xf32>
    %279 = arith.mulf %274, %278 : vector<8x32xf32>
    %cst_69 = arith.constant dense<0.000000e+00> : vector<8x128xf32>
    %280 = tpu.matmul %279, %200, %cst_69 {dimension_numbers = #tpu.dot_dimension_numbers<[1], [0], [0], [1], [0, 0, 1, 1], [], []>} : vector<8x32xf32>, vector<32x128xf32>, vector<8x128xf32> -> vector<8x128xf32>
    %281 = arith.addf %130, %280 : vector<8x128xf32>
    %282 = arith.negf %281 : vector<8x128xf32>
    %283 = math.exp %282 : vector<8x128xf32>
    %cst_70 = arith.constant 1.000000e+00 : f32
    %284 = vector.broadcast %cst_70 : f32 to vector<8x128xf32>
    %285 = arith.addf %284, %283 : vector<8x128xf32>
    %286 = arith.divf %284, %285 : vector<8x128xf32>
    %287 = vector.extract_strided_slice %286 {offsets = [0, 0], sizes = [8, 32], strides = [1, 1]} : vector<8x128xf32> to vector<8x32xf32>
    %288 = vector.extract_strided_slice %286 {offsets = [0, 32], sizes = [8, 32], strides = [1, 1]} : vector<8x128xf32> to vector<8x32xf32>
    %289 = vector.extract_strided_slice %286 {offsets = [0, 64], sizes = [8, 32], strides = [1, 1]} : vector<8x128xf32> to vector<8x32xf32>
    %cst_71 = arith.constant 2.000000e+00 : f32
    %290 = vector.broadcast %cst_71 : f32 to vector<8x32xf32>
    %291 = arith.mulf %290, %289 : vector<8x32xf32>
    %cst_72 = arith.constant 1.000000e+00 : f32
    %292 = vector.broadcast %cst_72 : f32 to vector<8x32xf32>
    %293 = arith.subf %291, %292 : vector<8x32xf32>
    %294 = vector.extract_strided_slice %286 {offsets = [0, 96], sizes = [8, 32], strides = [1, 1]} : vector<8x128xf32> to vector<8x32xf32>
    %295 = arith.mulf %288, %277 : vector<8x32xf32>
    %296 = arith.mulf %287, %293 : vector<8x32xf32>
    %297 = arith.addf %295, %296 : vector<8x32xf32>
    %298 = math.tanh %297 : vector<8x32xf32>
    %299 = arith.mulf %294, %298 : vector<8x32xf32>
    %cst_73 = arith.constant dense<0.000000e+00> : vector<8x128xf32>
    %300 = tpu.matmul %299, %200, %cst_73 {dimension_numbers = #tpu.dot_dimension_numbers<[1], [0], [0], [1], [0, 0, 1, 1], [], []>} : vector<8x32xf32>, vector<32x128xf32>, vector<8x128xf32> -> vector<8x128xf32>
    %301 = arith.addf %153, %300 : vector<8x128xf32>
    %302 = arith.negf %301 : vector<8x128xf32>
    %303 = math.exp %302 : vector<8x128xf32>
    %cst_74 = arith.constant 1.000000e+00 : f32
    %304 = vector.broadcast %cst_74 : f32 to vector<8x128xf32>
    %305 = arith.addf %304, %303 : vector<8x128xf32>
    %306 = arith.divf %304, %305 : vector<8x128xf32>
    %307 = vector.extract_strided_slice %306 {offsets = [0, 0], sizes = [8, 32], strides = [1, 1]} : vector<8x128xf32> to vector<8x32xf32>
    %308 = vector.extract_strided_slice %306 {offsets = [0, 32], sizes = [8, 32], strides = [1, 1]} : vector<8x128xf32> to vector<8x32xf32>
    %309 = vector.extract_strided_slice %306 {offsets = [0, 64], sizes = [8, 32], strides = [1, 1]} : vector<8x128xf32> to vector<8x32xf32>
    %cst_75 = arith.constant 2.000000e+00 : f32
    %310 = vector.broadcast %cst_75 : f32 to vector<8x32xf32>
    %311 = arith.mulf %310, %309 : vector<8x32xf32>
    %cst_76 = arith.constant 1.000000e+00 : f32
    %312 = vector.broadcast %cst_76 : f32 to vector<8x32xf32>
    %313 = arith.subf %311, %312 : vector<8x32xf32>
    %314 = vector.extract_strided_slice %306 {offsets = [0, 96], sizes = [8, 32], strides = [1, 1]} : vector<8x128xf32> to vector<8x32xf32>
    %315 = arith.mulf %308, %297 : vector<8x32xf32>
    %316 = arith.mulf %307, %313 : vector<8x32xf32>
    %317 = arith.addf %315, %316 : vector<8x32xf32>
    %318 = math.tanh %317 : vector<8x32xf32>
    %319 = arith.mulf %314, %318 : vector<8x32xf32>
    %cst_77 = arith.constant dense<0.000000e+00> : vector<8x128xf32>
    %320 = tpu.matmul %319, %200, %cst_77 {dimension_numbers = #tpu.dot_dimension_numbers<[1], [0], [0], [1], [0, 0, 1, 1], [], []>} : vector<8x32xf32>, vector<32x128xf32>, vector<8x128xf32> -> vector<8x128xf32>
    %321 = arith.addf %176, %320 : vector<8x128xf32>
    %322 = arith.negf %321 : vector<8x128xf32>
    %323 = math.exp %322 : vector<8x128xf32>
    %cst_78 = arith.constant 1.000000e+00 : f32
    %324 = vector.broadcast %cst_78 : f32 to vector<8x128xf32>
    %325 = arith.addf %324, %323 : vector<8x128xf32>
    %326 = arith.divf %324, %325 : vector<8x128xf32>
    %327 = vector.extract_strided_slice %326 {offsets = [0, 0], sizes = [8, 32], strides = [1, 1]} : vector<8x128xf32> to vector<8x32xf32>
    %328 = vector.extract_strided_slice %326 {offsets = [0, 32], sizes = [8, 32], strides = [1, 1]} : vector<8x128xf32> to vector<8x32xf32>
    %329 = vector.extract_strided_slice %326 {offsets = [0, 64], sizes = [8, 32], strides = [1, 1]} : vector<8x128xf32> to vector<8x32xf32>
    %cst_79 = arith.constant 2.000000e+00 : f32
    %330 = vector.broadcast %cst_79 : f32 to vector<8x32xf32>
    %331 = arith.mulf %330, %329 : vector<8x32xf32>
    %cst_80 = arith.constant 1.000000e+00 : f32
    %332 = vector.broadcast %cst_80 : f32 to vector<8x32xf32>
    %333 = arith.subf %331, %332 : vector<8x32xf32>
    %334 = vector.extract_strided_slice %326 {offsets = [0, 96], sizes = [8, 32], strides = [1, 1]} : vector<8x128xf32> to vector<8x32xf32>
    %335 = arith.mulf %328, %317 : vector<8x32xf32>
    %336 = arith.mulf %327, %333 : vector<8x32xf32>
    %337 = arith.addf %335, %336 : vector<8x32xf32>
    %338 = math.tanh %337 : vector<8x32xf32>
    %339 = arith.mulf %334, %338 : vector<8x32xf32>
    %cst_81 = arith.constant dense<0.000000e+00> : vector<8x128xf32>
    %340 = tpu.matmul %339, %200, %cst_81 {dimension_numbers = #tpu.dot_dimension_numbers<[1], [0], [0], [1], [0, 0, 1, 1], [], []>} : vector<8x32xf32>, vector<32x128xf32>, vector<8x128xf32> -> vector<8x128xf32>
    %341 = arith.addf %199, %340 : vector<8x128xf32>
    %342 = arith.negf %341 : vector<8x128xf32>
    %343 = math.exp %342 : vector<8x128xf32>
    %cst_82 = arith.constant 1.000000e+00 : f32
    %344 = vector.broadcast %cst_82 : f32 to vector<8x128xf32>
    %345 = arith.addf %344, %343 : vector<8x128xf32>
    %346 = arith.divf %344, %345 : vector<8x128xf32>
    %347 = vector.extract_strided_slice %346 {offsets = [0, 0], sizes = [8, 32], strides = [1, 1]} : vector<8x128xf32> to vector<8x32xf32>
    %348 = vector.extract_strided_slice %346 {offsets = [0, 32], sizes = [8, 32], strides = [1, 1]} : vector<8x128xf32> to vector<8x32xf32>
    %349 = vector.extract_strided_slice %346 {offsets = [0, 64], sizes = [8, 32], strides = [1, 1]} : vector<8x128xf32> to vector<8x32xf32>
    %cst_83 = arith.constant 2.000000e+00 : f32
    %350 = vector.broadcast %cst_83 : f32 to vector<8x32xf32>
    %351 = arith.mulf %350, %349 : vector<8x32xf32>
    %cst_84 = arith.constant 1.000000e+00 : f32
    %352 = vector.broadcast %cst_84 : f32 to vector<8x32xf32>
    %353 = arith.subf %351, %352 : vector<8x32xf32>
    %354 = vector.extract_strided_slice %346 {offsets = [0, 96], sizes = [8, 32], strides = [1, 1]} : vector<8x128xf32> to vector<8x32xf32>
    %355 = arith.mulf %348, %337 : vector<8x32xf32>
    %356 = arith.mulf %347, %353 : vector<8x32xf32>
    %357 = arith.addf %355, %356 : vector<8x32xf32>
    %358 = math.tanh %357 : vector<8x32xf32>
    %359 = arith.mulf %354, %358 : vector<8x32xf32>
    %c0_85 = arith.constant 0 : index
    %c0_86 = arith.constant 0 : index
    %360 = vector.load %arg7[%c0_85, %c0_86] : memref<32x4xf32, #tpu.memory_space<vmem>>, vector<32x4xf32>
    %cst_87 = arith.constant dense<0.000000e+00> : vector<8x4xf32>
    %361 = tpu.matmul %359, %360, %cst_87 {dimension_numbers = #tpu.dot_dimension_numbers<[1], [0], [0], [1], [0, 0, 1, 1], [], []>} : vector<8x32xf32>, vector<32x4xf32>, vector<8x4xf32> -> vector<8x4xf32>
    %c0_88 = arith.constant 0 : index
    %c0_89 = arith.constant 0 : index
    %362 = vector.load %arg8[%c0_88, %c0_89] : memref<1x4xf32, #tpu.memory_space<vmem>>, vector<1x4xf32>
    %363 = vector.broadcast %362 : vector<1x4xf32> to vector<8x4xf32>
    %364 = arith.addf %361, %363 : vector<8x4xf32>
    %c0_90 = arith.constant 0 : index
    %c0_91 = arith.constant 0 : index
    %365 = vector.load %arg9[%c0_90, %c0_91] : memref<8x4xf32, #tpu.memory_space<vmem>>, vector<8x4xf32>
    tpu.vector_store %arg9[%c0_90, %c0_91], %364 {strides = array<i32>} : memref<8x4xf32, #tpu.memory_space<vmem>>, vector<8x4xf32>,
    return
  }
}

</mosaic_0001>

<bundles_post_ra>
// kernel: net_forward.1
= control target key start
LH: loop header
LB: loop body
LE: loop exit
PB: predicated region body
PF: predicated region fallthrough
CT: control target
= control target key end

     0   :  { %vm45_vm0 = vcmask 64512   ;;  %vm164_vm5 = vcmask 261120   ;;  %s1874_s1 = inlined_call_operand.vmem [shape: f32[8,128], index: 1, kind: input, shape index: {}]   ;;  %s1875_s0 = inlined_call_operand.vmem [shape: f32[64,8], index: 0, kind: input, shape index: {}]   ;;  %s1876_s3 = inlined_call_operand.vmem [shape: f32[1,128], index: 3, kind: input, shape index: {}]   ;;  %s1877_s4 = inlined_call_operand.vmem [shape: f32[32,128], index: 4, kind: input, shape index: {}]   ;;  %s1878_s2 = inlined_call_operand.vmem [shape: f32[32,128], index: 2, kind: input, shape index: {}]   ;;  %s1879_s6 = inlined_call_operand.vmem [shape: f32[1,128], index: 6, kind: input, shape index: {}]   ;;  %s1880_s5 = inlined_call_operand.vmem [shape: f32[32,128], index: 5, kind: input, shape index: {}]   ;;  %s1881_s7 = inlined_call_operand.vmem [shape: f32[32,4], index: 7, kind: input, shape index: {}]   ;;  %s1882_s8 = inlined_call_operand.vmem [shape: f32[1,4], index: 8, kind: input, shape index: {}]   ;;  %s1883_s9 = inlined_call_operand.vmem [shape: f32[8,4], index: 9, kind: output, shape index: {}]  }
   0x1   :  { %v40_v0 = vld [vmem:[%s1874_s1] sm:$0xff]  ;;  %s1468_s1 = smov 64   ;;  %v1542_v26 = vld [vmem:[%s1877_s4 + $0x18] sm:$0xff]  ;;  %v1552_v28 = vld [vmem:[%s1877_s4 + $0x10] sm:$0xff] }
   0x2   :  { %v32_v1 = vld [vmem:[%s1875_s0] sm:$0xff]  ;;  %85 = vmatpush.msra.mxu0 %v40_v0  ;;  %v1547_v27 = vld [vmem:[%s1878_s2 + $0x18] sm:$0xff]  ;;  %179 = vmatpush.msra.mxu1 %v1542_v26  ;;  %v1559_v29 = vld [vmem:[%s1878_s2 + $0x10] sm:$0xff] }
   0x3   :  { %1304 = vmatmul.msk.f32.vlgmr.msra.gmra.mxu0 %vm45_vm0, %v32_v1  ;;  %v1530_v2 = vld [vmem:[%s1876_s3] ss:$0 sm:$0xff]  ;;  %s1469_s3 = smov 32   ;;  %199 = vmatpush.msra.mxu2 %v1547_v27  ;;  %v1564_v30 = vld [vmem:[%s1877_s4 + $0x8] sm:$0xff]  ;;  %v34_v63 = vld [vmem:[%s1875_s0 + $0x10] sm:$0xff] }
   0x4   :  { %v1569_v31 = vld [vmem:[%s1878_s2 + $0x8] sm:$0xff]  ;;  %263 = vmatpush.msra.mxu3 %v1542_v26  ;;  %180 = vmatpush.msra.mxu1 %v1552_v28  ;;  %v1577_v32 = vld [vmem:[%s1877_s4] sm:$0xff] }
   0x5   :  { %200 = vmatpush.msra.mxu2 %v1559_v29  ;;  %v1582_v33 = vld [vmem:[%s1878_s2] sm:$0xff]  ;;  %v33_v36 = vld [vmem:[%s1875_s0 + $0x8] sm:$0xff] }
   0x6   :  { %264 = vmatpush.msra.mxu3 %v1552_v28  ;;  %181 = vmatpush.msra.mxu1 %v1564_v30 }
   0x7   :  { %201 = vmatpush.msra.mxu2 %v1569_v31 }
   0x8   :  { %265 = vmatpush.msra.mxu3 %v1564_v30  ;;  %182 = vmatpush.msra.mxu1 %v1577_v32 }
   0x9   :  { %202 = vmatpush.msra.mxu2 %v1582_v33 }
   0xa   :  { %283 = vmatpush.msrb.mxu1 %v1547_v27  ;;  %266 = vmatpush.msra.mxu3 %v1577_v32 }
   0xb   :  { %347 = vmatpush.msrb.mxu2 %v1542_v26  ;;  %1305 = vmatmul.msk.f32.gmra.mxu0 %vm45_vm0, %v33_v36 }
   0xc   :  { %367 = vmatpush.msrb.mxu3 %v1547_v27  ;;  %284 = vmatpush.msrb.mxu1 %v1559_v29 }
   0xd   :  { %348 = vmatpush.msrb.mxu2 %v1552_v28 }
   0xe   :  { %368 = vmatpush.msrb.mxu3 %v1559_v29  ;;  %285 = vmatpush.msrb.mxu1 %v1569_v31 }
   0xf   :  { %349 = vmatpush.msrb.mxu2 %v1564_v30 }
  0x10   :  { %369 = vmatpush.msrb.mxu3 %v1569_v31  ;;  %286 = vmatpush.msrb.mxu1 %v1582_v33 }
  0x11   :  { %350 = vmatpush.msrb.mxu2 %v1577_v32 }
  0x12   :  { %370 = vmatpush.msrb.mxu3 %v1582_v33 }
  0x13   :  { %1306 = vmatmul.msk.f32.gmra.mxu0 %vm45_vm0, %v34_v63 }
  0x80   :  { %v87_v3 = vpop.f32.mrf.mxu0 }
  0x81   :  { %v88_v4 = vadd.f32 %v1530_v2, %v87_v3 }
  0x83   :  { %v1312_v5 = vmul.f32 -1.442695, %v88_v4 }
  0x85   :  { %1372 = vpow2.f32 %v1312_v5 }
  0x88   :  { %v90_v38 = vpop.f32.mrf.mxu0 }
  0x89   :  { %v91_v39 = vadd.f32 %v1530_v2, %v90_v38 }
  0x8b   :  { %v1373_v6 = vpop.eup %1372 }
  0x8c   :  { %v123_v7 = vadd.f32 1.0, %v1373_v6 }
  0x8e   :  { %1374 = vrcp.f32 %v123_v7  ;;  %v135_v11 = vand.u32 2147483648, %v123_v7  ;;  %v133_v13 = vand.u32 2147483647, %v123_v7  ;;  %vm129_vm2 = vweird.f32 %v123_v7 }
  0x90   :  { %v136_v15 = vor.u32 1.1754944e-38, %v135_v11  ;;  %vm134_vm4 = vcmp.eq.f32.partialorder %v133_v13, 8.507059e+37  ;;  %v93_v5 = vpop.f32.mrf.mxu0 }
  0x91   :  { %v94_v6 = vadd.f32 %v1530_v2, %v93_v5 }
  0x94   :  { %v1375_v8 = vpop.eup %1374 }
  0x95   :  { %v125_v9 = vmul.f32 %v1375_v8, %v123_v7  ;;  %vm130_vm1 = vweird.f32 %v1375_v8 }
  0x96   :  { %vm131_vm3 = vmor %vm129_vm2, %vm130_vm1 }
  0x97   :  { %v126_v10 = vsub.f32 1.0, %v125_v9 }
  0x99   :  { %v127_v12 = vmul.f32 %v1375_v8, %v126_v10 }
  0x9b   :  { %v128_v14 = vadd.f32 %v1375_v8, %v127_v12 }
  0x9d   :  { %v132_v16 = vsel %vm131_vm3, %v1375_v8, %v128_v14 }
  0x9e   :  { %v137_v17 = vsel %vm134_vm4, %v136_v15, %v132_v16 }
  0x9f   :  { %v139_v18 = vmul.f32 2.0, %v137_v17  ;;  %v141_v22 = vmul.f32 0.0, %v137_v17 }
  0xa1   :  { %v1313_v19 = vadd.f32 -1.0, %v139_v18 }
  0xa3   :  { %143 = vrot.lane.b32.xlu0 %v1313_v19, %s1468_s1 }
 0x115   :  { %v144_v20 = vpop.permute.xlu0 %143 }
 0x116   :  { %v146_v21 = vmul.f32 %v144_v20, %v137_v17 }
 0x118   :  { %148 = vrot.lane.b32.xlu0 %v146_v21, %s1469_s3 }
 0x18a   :  { %v149_v23 = vpop.permute.xlu0 %148 }
 0x18b   :  { %v1535_v24 = vadd.f32 %v149_v23, %v141_v22 }
 0x18d   :  { %1376 = vtanh.f32 %v1535_v24 }
 0x193   :  { %v1377_v25 = vpop.eup %1376 }
 0x194   :  { %154 = vrot.lane.b32.xlu1 %v1377_v25, %s1468_s1 }
 0x206   :  { %v155_v34 = vpop.permute.xlu1 %154 }
 0x207   :  { %v157_v35 = vmul.f32 %v155_v34, %v137_v17 }
 0x209   :  { %162 = vrot.lane.b32.xlu1 %v157_v35, %s1469_s3 }
 0x27b   :  { %v163_v37 = vpop.permute.xlu1 %162 }
 0x27c   :  { %1314 = vmatmul.msk.f32.vlgmr.msra.gmra.mxu1 %vm164_vm5, %v163_v37  ;;  %1315 = vmatmul.msk.f32.vlgmr.msra.gmra.mxu2 %vm164_vm5, %v163_v37 }
 0x27d   :  { %451 = vmatpush.msra.mxu2 %v1547_v27  ;;  %431 = vmatpush.msra.mxu1 %v1542_v26 }
 0x27f   :  { %452 = vmatpush.msra.mxu2 %v1559_v29  ;;  %432 = vmatpush.msra.mxu1 %v1552_v28 }
 0x281   :  { %453 = vmatpush.msra.mxu2 %v1569_v31  ;;  %433 = vmatpush.msra.mxu1 %v1564_v30 }
 0x283   :  { %454 = vmatpush.msra.mxu2 %v1582_v33  ;;  %434 = vmatpush.msra.mxu1 %v1577_v32 }
 0x2f9   :  { %v1638_v4 = vpop.f32.mrf.mxu1 }
 0x2ff   :  { %v204_v40 = vpop.f32.mrf.mxu2 }
 0x300   :  { %v207_v41 = vadd.f32 %v204_v40, %v91_v39  ;;  %v35_v40 = vld [vmem:[%s1875_s0 + $0x18] sm:$0xff] }
 0x301   :  { %1307 = vmatmul.msk.f32.gmra.mxu0 %vm45_vm0, %v35_v40  ;;  %v37_v40 = vld [vmem:[%s1875_s0 + $0x28] sm:$0xff] }
 0x302   :  { %v1316_v42 = vmul.f32 -1.442695, %v207_v41 }
 0x304   :  { %1378 = vpow2.f32 %v1316_v42 }
 0x30a   :  { %v1379_v43 = vpop.eup %1378 }
 0x30b   :  { %v211_v44 = vadd.f32 1.0, %v1379_v43 }
 0x30d   :  { %1380 = vrcp.f32 %v211_v44  ;;  %v223_v48 = vand.u32 2147483648, %v211_v44  ;;  %v221_v50 = vand.u32 2147483647, %v211_v44  ;;  %vm217_vm7 = vweird.f32 %v211_v44 }
 0x30f   :  { %v224_v52 = vor.u32 1.1754944e-38, %v223_v48  ;;  %vm222_vm9 = vcmp.eq.f32.partialorder %v221_v50, 8.507059e+37 }
 0x313   :  { %v1381_v45 = vpop.eup %1380 }
 0x314   :  { %v213_v46 = vmul.f32 %v1381_v45, %v211_v44  ;;  %vm218_vm6 = vweird.f32 %v1381_v45 }
 0x315   :  { %vm219_vm8 = vmor %vm217_vm7, %vm218_vm6 }
 0x316   :  { %v214_v47 = vsub.f32 1.0, %v213_v46 }
 0x318   :  { %v215_v49 = vmul.f32 %v1381_v45, %v214_v47 }
 0x31a   :  { %v216_v51 = vadd.f32 %v1381_v45, %v215_v49 }
 0x31c   :  { %v220_v53 = vsel %vm219_vm8, %v1381_v45, %v216_v51 }
 0x31d   :  { %v225_v54 = vsel %vm222_vm9, %v224_v52, %v220_v53 }
 0x31e   :  { %v227_v55 = vmul.f32 2.0, %v225_v54  ;;  %v229_v59 = vmul.f32 %v225_v54, %v1535_v24 }
 0x320   :  { %v1317_v56 = vadd.f32 -1.0, %v227_v55 }
 0x322   :  { %231 = vrot.lane.b32.xlu2 %v1317_v56, %s1468_s1 }
 0x37c   :  { %v232_v57 = vpop.permute.xlu2 %231 }
 0x37d   :  { %v234_v58 = vmul.f32 %v232_v57, %v225_v54 }
 0x37e   :  { %v96_v43 = vpop.f32.mrf.mxu0 }
 0x37f   :  { %236 = vrot.lane.b32.xlu2 %v234_v58, %s1469_s3  ;;  %v97_v44 = vadd.f32 %v1530_v2, %v96_v43 }
 0x3d9   :  { %v237_v60 = vpop.permute.xlu2 %236 }
 0x3da   :  { %v239_v61 = vadd.f32 %v237_v60, %v229_v59 }
 0x3dc   :  { %1382 = vtanh.f32 %v239_v61 }
 0x3e2   :  { %v1383_v62 = vpop.eup %1382 }
 0x3e3   :  { %242 = vrot.lane.b32.xlu0 %v1383_v62, %s1468_s1 }
 0x455   :  { %v243_v0 = vpop.permute.xlu0 %242 }
 0x456   :  { %v245_v1 = vmul.f32 %v243_v0, %v225_v54 }
 0x458   :  { %247 = vrot.lane.b32.xlu1 %v245_v1, %s1469_s3 }
 0x4ca   :  { %v248_v3 = vpop.permute.xlu1 %247 }
 0x4cb   :  { %1318 = vmatmul.msk.f32.vlgmr.msra.gmra.mxu3 %vm164_vm5, %v248_v3  ;;  %1319 = vmatmul.msk.f32.vlgmr.msrb.gmra.mxu1 %vm164_vm5, %v248_v3 }
 0x4cc   :  { %535 = vmatpush.msrb.mxu1 %v1547_v27  ;;  %515 = vmatpush.msra.mxu3 %v1542_v26 }
 0x4ce   :  { %536 = vmatpush.msrb.mxu1 %v1559_v29  ;;  %516 = vmatpush.msra.mxu3 %v1552_v28 }
 0x4d0   :  { %537 = vmatpush.msrb.mxu1 %v1569_v31  ;;  %517 = vmatpush.msra.mxu3 %v1564_v30 }
 0x4d2   :  { %538 = vmatpush.msrb.mxu1 %v1582_v33  ;;  %518 = vmatpush.msra.mxu3 %v1577_v32 }
 0x548   :  { %v288_v7 = vpop.f32.mrf.mxu1 }
 0x549   :  { %v291_v8 = vadd.f32 %v288_v7, %v94_v6 }
 0x54b   :  { %v1320_v9 = vmul.f32 -1.442695, %v291_v8  ;;  %v36_v8 = vld [vmem:[%s1875_s0 + $0x20] sm:$0xff] }
 0x54c   :  { %1308 = vmatmul.msk.f32.gmra.mxu0 %vm45_vm0, %v36_v8 }
 0x54d   :  { %1384 = vpow2.f32 %v1320_v9 }
 0x54e   :  { %v1659_v42 = vpop.f32.mrf.mxu3 }
 0x553   :  { %v1385_v10 = vpop.eup %1384 }
 0x554   :  { %v295_v11 = vadd.f32 1.0, %v1385_v10  ;;  %1309 = vmatmul.msk.f32.gmra.mxu0 %vm45_vm0, %v37_v40 }
 0x556   :  { %1386 = vrcp.f32 %v295_v11  ;;  %v307_v15 = vand.u32 2147483648, %v295_v11  ;;  %v305_v17 = vand.u32 2147483647, %v295_v11  ;;  %vm301_vm11 = vweird.f32 %v295_v11 }
 0x558   :  { %v308_v19 = vor.u32 1.1754944e-38, %v307_v15  ;;  %vm306_vm13 = vcmp.eq.f32.partialorder %v305_v17, 8.507059e+37 }
 0x55c   :  { %v1387_v12 = vpop.eup %1386 }
 0x55d   :  { %v297_v13 = vmul.f32 %v1387_v12, %v295_v11  ;;  %vm302_vm10 = vweird.f32 %v1387_v12 }
 0x55e   :  { %vm303_vm12 = vmor %vm301_vm11, %vm302_vm10 }
 0x55f   :  { %v298_v14 = vsub.f32 1.0, %v297_v13 }
 0x561   :  { %v299_v16 = vmul.f32 %v1387_v12, %v298_v14 }
 0x563   :  { %v300_v18 = vadd.f32 %v1387_v12, %v299_v16 }
 0x565   :  { %v304_v20 = vsel %vm303_vm12, %v1387_v12, %v300_v18 }
 0x566   :  { %v309_v21 = vsel %vm306_vm13, %v308_v19, %v304_v20 }
 0x567   :  { %v311_v22 = vmul.f32 2.0, %v309_v21  ;;  %v313_v34 = vmul.f32 %v309_v21, %v239_v61 }
 0x569   :  { %v1321_v23 = vadd.f32 -1.0, %v311_v22 }
 0x56b   :  { %315 = vrot.lane.b32.xlu2 %v1321_v23, %s1468_s1 }
 0x5c5   :  { %v316_v24 = vpop.permute.xlu2 %315 }
 0x5c6   :  { %v318_v25 = vmul.f32 %v316_v24, %v309_v21 }
 0x5c8   :  { %320 = vrot.lane.b32.xlu0 %v318_v25, %s1469_s3 }
 0x5c9   :  { %v99_v11 = vpop.f32.mrf.mxu0 }
 0x5ca   :  { %v100_v12 = vadd.f32 %v1530_v2, %v99_v11 }
 0x63a   :  { %v321_v35 = vpop.permute.xlu0 %320 }
 0x63b   :  { %v323_v36 = vadd.f32 %v321_v35, %v313_v34 }
 0x63d   :  { %1388 = vtanh.f32 %v323_v36 }
 0x643   :  { %v1389_v37 = vpop.eup %1388 }
 0x644   :  { %326 = vrot.lane.b32.xlu1 %v1389_v37, %s1468_s1 }
 0x6b6   :  { %v327_v38 = vpop.permute.xlu1 %326 }
 0x6b7   :  { %v329_v39 = vmul.f32 %v327_v38, %v309_v21 }
 0x6b9   :  { %331 = vrot.lane.b32.xlu2 %v329_v39, %s1469_s3 }
 0x713   :  { %v332_v41 = vpop.permute.xlu2 %331 }
 0x714   :  { %1322 = vmatmul.msk.f32.vlgmr.msrb.gmra.mxu2 %vm164_vm5, %v332_v41  ;;  %1323 = vmatmul.msk.f32.vlgmr.msrb.gmra.mxu3 %vm164_vm5, %v332_v41 }
 0x715   :  { %619 = vmatpush.msrb.mxu3 %v1547_v27  ;;  %599 = vmatpush.msrb.mxu2 %v1542_v26 }
 0x717   :  { %620 = vmatpush.msrb.mxu3 %v1559_v29  ;;  %600 = vmatpush.msrb.mxu2 %v1552_v28 }
 0x719   :  { %621 = vmatpush.msrb.mxu3 %v1569_v31  ;;  %601 = vmatpush.msrb.mxu2 %v1564_v30 }
 0x71b   :  { %622 = vmatpush.msrb.mxu3 %v1582_v33  ;;  %602 = vmatpush.msrb.mxu2 %v1577_v32 }
 0x797   :  { %v372_v45 = vpop.f32.mrf.mxu3  ;;  %v1680_v10 = vpop.f32.mrf.mxu2 }
 0x798   :  { %v375_v46 = vadd.f32 %v372_v45, %v97_v44 }
 0x79a   :  { %v1324_v47 = vmul.f32 -1.442695, %v375_v46  ;;  %v102_v46 = vpop.f32.mrf.mxu0 }
 0x79c   :  { %1390 = vpow2.f32 %v1324_v47  ;;  %v103_v47 = vadd.f32 %v1530_v2, %v102_v46 }
 0x7a2   :  { %v1391_v48 = vpop.eup %1390 }
 0x7a3   :  { %v379_v49 = vadd.f32 1.0, %v1391_v48 }
 0x7a5   :  { %1392 = vrcp.f32 %v379_v49  ;;  %v391_v53 = vand.u32 2147483648, %v379_v49  ;;  %v389_v55 = vand.u32 2147483647, %v379_v49  ;;  %vm385_vm15 = vweird.f32 %v379_v49 }
 0x7a7   :  { %v392_v57 = vor.u32 1.1754944e-38, %v391_v53  ;;  %vm390_vm2 = vcmp.eq.f32.partialorder %v389_v55, 8.507059e+37 }
 0x7ab   :  { %v1393_v50 = vpop.eup %1392 }
 0x7ac   :  { %v381_v51 = vmul.f32 %v1393_v50, %v379_v49  ;;  %vm386_vm14 = vweird.f32 %v1393_v50 }
 0x7ad   :  { %vm387_vm1 = vmor %vm385_vm15, %vm386_vm14 }
 0x7ae   :  { %v382_v52 = vsub.f32 1.0, %v381_v51 }
 0x7b0   :  { %v383_v54 = vmul.f32 %v1393_v50, %v382_v52 }
 0x7b2   :  { %v384_v56 = vadd.f32 %v1393_v50, %v383_v54 }
 0x7b4   :  { %v388_v58 = vsel %vm387_vm1, %v1393_v50, %v384_v56 }
 0x7b5   :  { %v393_v59 = vsel %vm390_vm2, %v392_v57, %v388_v58 }
 0x7b6   :  { %v395_v60 = vmul.f32 2.0, %v393_v59  ;;  %v397_v0 = vmul.f32 %v393_v59, %v323_v36 }
 0x7b8   :  { %v1325_v61 = vadd.f32 -1.0, %v395_v60 }
 0x7ba   :  { %399 = vrot.lane.b32.xlu0 %v1325_v61, %s1468_s1 }
 0x82c   :  { %v400_v62 = vpop.permute.xlu0 %399 }
 0x82d   :  { %v402_v63 = vmul.f32 %v400_v62, %v393_v59 }
 0x82f   :  { %404 = vrot.lane.b32.xlu1 %v402_v63, %s1469_s3  ;;  %v1705_v63 = vld [vmem:[%s1879_s6] ss:$0 sm:$0xff] }
 0x8a1   :  { %v405_v1 = vpop.permute.xlu1 %404 }
 0x8a2   :  { %v407_v3 = vadd.f32 %v405_v1, %v397_v0  ;;  %v185_v0 = vadd.f32 %v1705_v63, %v1638_v4 }
 0x8a4   :  { %1394 = vtanh.f32 %v407_v3  ;;  %v1343_v1 = vmul.f32 -1.442695, %v185_v0 }
 0x8aa   :  { %v1395_v5 = vpop.eup %1394 }
 0x8ab   :  { %410 = vrot.lane.b32.xlu2 %v1395_v5, %s1468_s1 }
 0x905   :  { %v411_v6 = vpop.permute.xlu2 %410 }
 0x906   :  { %v413_v7 = vmul.f32 %v411_v6, %v393_v59 }
 0x908   :  { %415 = vrot.lane.b32.xlu0 %v413_v7, %s1469_s3 }
 0x97a   :  { %v416_v9 = vpop.permute.xlu0 %415 }
 0x97b   :  { %1326 = vmatmul.msk.f32.vlgmr.msra.gmra.mxu1 %vm164_vm5, %v416_v9  ;;  %1327 = vmatmul.msk.f32.vlgmr.msra.gmra.mxu2 %vm164_vm5, %v416_v9 }
 0x97c   :  { %683 = vmatpush.msra.mxu1 %v1542_v26  ;;  %703 = vmatpush.msra.mxu2 %v1547_v27 }
 0x97e   :  { %684 = vmatpush.msra.mxu1 %v1552_v28  ;;  %704 = vmatpush.msra.mxu2 %v1559_v29 }
 0x980   :  { %685 = vmatpush.msra.mxu1 %v1564_v30  ;;  %705 = vmatpush.msra.mxu2 %v1569_v31 }
 0x982   :  { %686 = vmatpush.msra.mxu1 %v1577_v32  ;;  %706 = vmatpush.msra.mxu2 %v1582_v33 }
 0x9f8   :  { %v1697_v45 = vpop.f32.mrf.mxu1 }
 0x9fe   :  { %v456_v13 = vpop.f32.mrf.mxu2 }
 0x9ff   :  { %v459_v14 = vadd.f32 %v456_v13, %v100_v12 }
 0xa01   :  { %v1328_v27 = vmul.f32 -1.442695, %v459_v14 }
 0xa03   :  { %1396 = vpow2.f32 %v1328_v27 }
 0xa09   :  { %v1397_v15 = vpop.eup %1396 }
 0xa0a   :  { %v463_v16 = vadd.f32 1.0, %v1397_v15 }
 0xa0c   :  { %1398 = vrcp.f32 %v463_v16  ;;  %v475_v31 = vand.u32 2147483648, %v463_v16  ;;  %v473_v20 = vand.u32 2147483647, %v463_v16  ;;  %vm469_vm4 = vweird.f32 %v463_v16 }
 0xa0e   :  { %v476_v21 = vor.u32 1.1754944e-38, %v475_v31  ;;  %vm474_vm7 = vcmp.eq.f32.partialorder %v473_v20, 8.507059e+37 }
 0xa12   :  { %v1399_v29 = vpop.eup %1398 }
 0xa13   :  { %v465_v17 = vmul.f32 %v1399_v29, %v463_v16  ;;  %vm470_vm3 = vweird.f32 %v1399_v29 }
 0xa14   :  { %vm471_vm6 = vmor %vm469_vm4, %vm470_vm3 }
 0xa15   :  { %v466_v18 = vsub.f32 1.0, %v465_v17 }
 0xa17   :  { %v467_v19 = vmul.f32 %v1399_v29, %v466_v18 }
 0xa19   :  { %v468_v33 = vadd.f32 %v1399_v29, %v467_v19 }
 0xa1b   :  { %v472_v22 = vsel %vm471_vm6, %v1399_v29, %v468_v33  ;;  %v38_v33 = vld [vmem:[%s1875_s0 + $0x30] sm:$0xff] }
 0xa1c   :  { %v477_v23 = vsel %vm474_vm7, %v476_v21, %v472_v22  ;;  %1310 = vmatmul.msk.f32.gmra.mxu0 %vm45_vm0, %v38_v33 }
 0xa1d   :  { %v479_v24 = vmul.f32 2.0, %v477_v23  ;;  %v481_v36 = vmul.f32 %v477_v23, %v407_v3 }
 0xa1f   :  { %v1329_v25 = vadd.f32 -1.0, %v479_v24 }
 0xa21   :  { %483 = vrot.lane.b32.xlu1 %v1329_v25, %s1468_s1 }
 0xa93   :  { %v484_v34 = vpop.permute.xlu1 %483 }
 0xa94   :  { %v486_v35 = vmul.f32 %v484_v34, %v477_v23 }
 0xa96   :  { %488 = vrot.lane.b32.xlu2 %v486_v35, %s1469_s3 }
 0xaf0   :  { %v489_v37 = vpop.permute.xlu2 %488 }
 0xaf1   :  { %v491_v38 = vadd.f32 %v489_v37, %v481_v36 }
 0xaf3   :  { %1400 = vtanh.f32 %v491_v38 }
 0xaf9   :  { %v1401_v39 = vpop.eup %1400 }
 0xafa   :  { %494 = vrot.lane.b32.xlu0 %v1401_v39, %s1468_s1 }
 0xb6c   :  { %v495_v41 = vpop.permute.xlu0 %494 }
 0xb6d   :  { %v497_v43 = vmul.f32 %v495_v41, %v477_v23  ;;  %v105_v23 = vpop.f32.mrf.mxu0 }
 0xb6e   :  { %v106_v24 = vadd.f32 %v1530_v2, %v105_v23 }
 0xb6f   :  { %499 = vrot.lane.b32.xlu1 %v497_v43, %s1469_s3 }
 0xbe1   :  { %v500_v44 = vpop.permute.xlu1 %499 }
 0xbe2   :  { %1330 = vmatmul.msk.f32.vlgmr.msra.gmra.mxu3 %vm164_vm5, %v500_v44  ;;  %1331 = vmatmul.msk.f32.vlgmr.msrb.gmra.mxu1 %vm164_vm5, %v500_v44 }
 0xbe3   :  { %767 = vmatpush.msra.mxu3 %v1542_v26 }
 0xbe5   :  { %768 = vmatpush.msra.mxu3 %v1552_v28 }
 0xbe7   :  { %769 = vmatpush.msra.mxu3 %v1564_v30 }
 0xbe9   :  { %770 = vmatpush.msra.mxu3 %v1577_v32 }
 0xc5f   :  { %v540_v48 = vpop.f32.mrf.mxu1 }
 0xc60   :  { %v543_v49 = vadd.f32 %v540_v48, %v103_v47 }
 0xc62   :  { %v1332_v50 = vmul.f32 -1.442695, %v543_v49 }
 0xc64   :  { %1402 = vpow2.f32 %v1332_v50 }
 0xc65   :  { %v1721_v22 = vpop.f32.mrf.mxu3 }
 0xc6a   :  { %v1403_v51 = vpop.eup %1402 }
 0xc6b   :  { %v547_v52 = vadd.f32 1.0, %v1403_v51 }
 0xc6d   :  { %1404 = vrcp.f32 %v547_v52  ;;  %v559_v28 = vand.u32 2147483648, %v547_v52  ;;  %v557_v30 = vand.u32 2147483647, %v547_v52  ;;  %vm553_vm9 = vweird.f32 %v547_v52 }
 0xc6e   :  { %1406 = vpow2.f32 %v1343_v1  ;;  %v1741_v1 = vld [vmem:[%s1880_s5 + $0x18] sm:$0xff] }
 0xc6f   :  { %v560_v56 = vor.u32 1.1754944e-38, %v559_v28  ;;  %vm558_vm11 = vcmp.eq.f32.partialorder %v557_v30, 8.507059e+37  ;;  %834 = vmatpush.msrb.mxu1 %v1741_v1 }
 0xc73   :  { %v1405_v53 = vpop.eup %1404 }
 0xc74   :  { %v549_v26 = vmul.f32 %v1405_v53, %v547_v52  ;;  %vm554_vm8 = vweird.f32 %v1405_v53  ;;  %v1407_v3 = vpop.eup %1406 }
 0xc75   :  { %vm555_vm10 = vmor %vm553_vm9, %vm554_vm8  ;;  %v782_v5 = vadd.f32 1.0, %v1407_v3  ;;  %v1746_v3 = vld [vmem:[%s1880_s5 + $0x10] sm:$0xff] }
 0xc76   :  { %v550_v54 = vsub.f32 1.0, %v549_v26  ;;  %835 = vmatpush.msrb.mxu1 %v1746_v3 }
 0xc77   :  { %1408 = vrcp.f32 %v782_v5  ;;  %v794_v27 = vand.u32 2147483648, %v782_v5  ;;  %vm788_vm13 = vweird.f32 %v782_v5  ;;  %v792_v4 = vand.u32 2147483647, %v782_v5 }
 0xc78   :  { %v551_v55 = vmul.f32 %v1405_v53, %v550_v54 }
 0xc79   :  { %v795_v16 = vor.u32 1.1754944e-38, %v794_v27  ;;  %vm793_vm15 = vcmp.eq.f32.partialorder %v792_v4, 8.507059e+37 }
 0xc7a   :  { %v552_v32 = vadd.f32 %v1405_v53, %v551_v55 }
 0xc7c   :  { %v556_v57 = vsel %vm555_vm10, %v1405_v53, %v552_v32 }
 0xc7d   :  { %v561_v58 = vsel %vm558_vm11, %v560_v56, %v556_v57  ;;  %v1409_v6 = vpop.eup %1408 }
 0xc7e   :  { %v563_v59 = vmul.f32 2.0, %v561_v58  ;;  %v784_v7 = vmul.f32 %v1409_v6, %v782_v5  ;;  %v565_v11 = vmul.f32 %v561_v58, %v491_v38  ;;  %vm789_vm12 = vweird.f32 %v1409_v6  ;;  %v39_v5 = vld [vmem:[%s1875_s0 + $0x38] sm:$0xff] }
 0xc7f   :  { %vm790_vm14 = vmor %vm788_vm13, %vm789_vm12  ;;  %1311 = vmatmul.msk.f32.gmra.mxu0 %vm45_vm0, %v39_v5 }
 0xc80   :  { %v1333_v60 = vadd.f32 -1.0, %v563_v59  ;;  %v785_v8 = vsub.f32 1.0, %v784_v7  ;;  %v1764_v7 = vld [vmem:[%s1880_s5] sm:$0xff] }
 0xc82   :  { %567 = vrot.lane.b32.xlu2 %v1333_v60, %s1468_s1  ;;  %v786_v9 = vmul.f32 %v1409_v6, %v785_v8 }
 0xc84   :  { %v787_v14 = vadd.f32 %v1409_v6, %v786_v9 }
 0xc86   :  { %v791_v15 = vsel %vm790_vm14, %v1409_v6, %v787_v14  ;;  %v1756_v6 = vld [vmem:[%s1880_s5 + $0x8] sm:$0xff] }
 0xc87   :  { %v796_v17 = vsel %vm793_vm15, %v795_v16, %v791_v15  ;;  %836 = vmatpush.msrb.mxu1 %v1756_v6 }
 0xc88   :  { %v798_v18 = vmul.f32 2.0, %v796_v17  ;;  %v800_v28 = vmul.f32 0.0, %v796_v17 }
 0xc89   :  { %837 = vmatpush.msrb.mxu1 %v1764_v7 }
 0xc8a   :  { %v1344_v31 = vadd.f32 -1.0, %v798_v18 }
 0xcdc   :  { %v568_v61 = vpop.permute.xlu2 %567 }
 0xcdd   :  { %v570_v62 = vmul.f32 %v568_v61, %v561_v58 }
 0xcdf   :  { %572 = vrot.lane.b32.xlu0 %v570_v62, %s1469_s3 }
 0xd51   :  { %v573_v12 = vpop.permute.xlu0 %572 }
 0xd52   :  { %v1709_v13 = vadd.f32 %v573_v12, %v565_v11  ;;  %v269_v12 = vadd.f32 %v1705_v63, %v1659_v42 }
 0xd54   :  { %1410 = vtanh.f32 %v1709_v13 }
 0xd5a   :  { %v1411_v29 = vpop.eup %1410 }
 0xd5b   :  { %578 = vrot.lane.b32.xlu1 %v1411_v29, %s1468_s1 }
 0xd63   :  { %802 = vrot.lane.b32.xlu1 %v1344_v31, %s1468_s1 }
 0xdcd   :  { %v579_v19 = vpop.permute.xlu1 %578 }
 0xdce   :  { %v581_v20 = vmul.f32 %v579_v19, %v561_v58 }
 0xdd0   :  { %583 = vrot.lane.b32.xlu2 %v581_v20, %s1469_s3 }
 0xdd5   :  { %v803_v52 = vpop.permute.xlu1 %802 }
 0xdd6   :  { %v805_v53 = vmul.f32 %v803_v52, %v796_v17 }
 0xe2a   :  { %v584_v21 = vpop.permute.xlu2 %583 }
 0xe2b   :  { %1334 = vmatmul.msk.f32.vlgmr.msrb.gmra.mxu2 %vm164_vm5, %v584_v21  ;;  %1335 = vmatmul.msk.f32.vlgmr.msrb.gmra.mxu3 %vm164_vm5, %v584_v21 }
 0xe2c   :  { %898 = vmatpush.msrb.mxu2 %v1741_v1  ;;  %962 = vmatpush.msrb.mxu3 %v1741_v1 }
 0xe2e   :  { %899 = vmatpush.msrb.mxu2 %v1746_v3  ;;  %963 = vmatpush.msrb.mxu3 %v1746_v3 }
 0xe30   :  { %900 = vmatpush.msrb.mxu2 %v1756_v6  ;;  %964 = vmatpush.msrb.mxu3 %v1756_v6 }
 0xe32   :  { %901 = vmatpush.msrb.mxu2 %v1764_v7  ;;  %965 = vmatpush.msrb.mxu3 %v1764_v7 }
 0xeae   :  { %v624_v25 = vpop.f32.mrf.mxu3 }
 0xeaf   :  { %v627_v34 = vadd.f32 %v624_v25, %v106_v24  ;;  %v1794_v25 = vpop.f32.mrf.mxu2 }
 0xeb1   :  { %v1336_v35 = vmul.f32 -1.442695, %v627_v34  ;;  %v108_v34 = vpop.f32.mrf.mxu0 }
 0xeb3   :  { %1412 = vpow2.f32 %v1336_v35  ;;  %v109_v35 = vadd.f32 %v1530_v2, %v108_v34 }
 0xeb9   :  { %v1413_v36 = vpop.eup %1412 }
 0xeba   :  { %v631_v37 = vadd.f32 1.0, %v1413_v36 }
 0xebc   :  { %1414 = vrcp.f32 %v631_v37  ;;  %v643_v41 = vand.u32 2147483648, %v631_v37  ;;  %v641_v44 = vand.u32 2147483647, %v631_v37  ;;  %vm637_vm2 = vweird.f32 %v631_v37 }
 0xebe   :  { %v644_v47 = vor.u32 1.1754944e-38, %v643_v41  ;;  %vm642_vm4 = vcmp.eq.f32.partialorder %v641_v44, 8.507059e+37 }
 0xec2   :  { %v1415_v38 = vpop.eup %1414 }
 0xec3   :  { %v633_v39 = vmul.f32 %v1415_v38, %v631_v37  ;;  %vm638_vm1 = vweird.f32 %v1415_v38 }
 0xec4   :  { %vm639_vm3 = vmor %vm637_vm2, %vm638_vm1 }
 0xec5   :  { %v634_v40 = vsub.f32 1.0, %v633_v39 }
 0xec7   :  { %v635_v43 = vmul.f32 %v1415_v38, %v634_v40 }
 0xec9   :  { %v636_v46 = vadd.f32 %v1415_v38, %v635_v43 }
 0xecb   :  { %v640_v48 = vsel %vm639_vm3, %v1415_v38, %v636_v46 }
 0xecc   :  { %v645_v49 = vsel %vm642_vm4, %v644_v47, %v640_v48 }
 0xecd   :  { %v647_v50 = vmul.f32 2.0, %v645_v49  ;;  %v649_v56 = vmul.f32 %v645_v49, %v1709_v13 }
 0xecf   :  { %v1337_v51 = vadd.f32 -1.0, %v647_v50 }
 0xed1   :  { %651 = vrot.lane.b32.xlu0 %v1337_v51, %s1468_s1 }
 0xed9   :  { %807 = vrot.lane.b32.xlu0 %v805_v53, %s1469_s3 }
 0xf43   :  { %v652_v26 = vpop.permute.xlu0 %651 }
 0xf44   :  { %v654_v54 = vmul.f32 %v652_v26, %v645_v49 }
 0xf46   :  { %656 = vrot.lane.b32.xlu2 %v654_v54, %s1469_s3 }
 0xf4b   :  { %v808_v55 = vpop.permute.xlu0 %807 }
 0xf4c   :  { %v1727_v30 = vadd.f32 %v808_v55, %v800_v28 }
 0xf4e   :  { %1416 = vtanh.f32 %v1727_v30 }
 0xf54   :  { %v1417_v32 = vpop.eup %1416 }
 0xf55   :  { %813 = vrot.lane.b32.xlu2 %v1417_v32, %s1468_s1 }
 0xfa0   :  { %v657_v57 = vpop.permute.xlu2 %656 }
 0xfa1   :  { %v1732_v58 = vadd.f32 %v657_v57, %v649_v56 }
 0xfa3   :  { %1418 = vtanh.f32 %v1732_v58 }
 0xfa9   :  { %v1419_v59 = vpop.eup %1418 }
 0xfaa   :  { %662 = vrot.lane.b32.xlu1 %v1419_v59, %s1468_s1 }
 0xfaf   :  { %v814_v60 = vpop.permute.xlu2 %813 }
 0xfb0   :  { %v816_v61 = vmul.f32 %v814_v60, %v796_v17 }
 0xfb2   :  { %818 = vrot.lane.b32.xlu1 %v816_v61, %s1469_s3 }
0x101c   :  { %v663_v62 = vpop.permute.xlu1 %662 }
0x101d   :  { %v665_v0 = vmul.f32 %v663_v62, %v645_v49 }
0x101f   :  { %667 = vrot.lane.b32.xlu0 %v665_v0, %s1469_s3 }
0x1024   :  { %v819_v9 = vpop.permute.xlu1 %818 }
0x1091   :  { %v668_v8 = vpop.permute.xlu0 %667 }
0x1092   :  { %1338 = vmatmul.msk.f32.vlgmr.msra.gmra.mxu1 %vm164_vm5, %v668_v8  ;;  %1339 = vmatmul.msk.f32.vlgmr.msra.gmra.mxu2 %vm164_vm5, %v668_v8 }
0x1093   :  { %1026 = vmatpush.msra.mxu1 %v1741_v1  ;;  %1090 = vmatpush.msra.mxu2 %v1741_v1 }
0x1095   :  { %1027 = vmatpush.msra.mxu1 %v1746_v3  ;;  %1091 = vmatpush.msra.mxu2 %v1746_v3 }
0x1097   :  { %1028 = vmatpush.msra.mxu1 %v1756_v6  ;;  %1092 = vmatpush.msra.mxu2 %v1756_v6 }
0x1099   :  { %1029 = vmatpush.msra.mxu1 %v1764_v7  ;;  %1093 = vmatpush.msra.mxu2 %v1764_v7 }
0x109a   :  { %1345 = vmatmul.msk.f32.vlgmr.msrb.gmra.mxu1 %vm164_vm5, %v819_v9 }
0x109b   :  { %1218 = vmatpush.msrb.mxu1 %v1741_v1 }
0x109d   :  { %1219 = vmatpush.msrb.mxu1 %v1746_v3 }
0x109f   :  { %1220 = vmatpush.msrb.mxu1 %v1756_v6 }
0x10a1   :  { %1221 = vmatpush.msrb.mxu1 %v1764_v7 }
0x110f   :  { %v1789_v11 = vpop.f32.mrf.mxu1 }
0x1115   :  { %v708_v36 = vpop.f32.mrf.mxu2 }
0x1116   :  { %v711_v37 = vadd.f32 %v708_v36, %v109_v35 }
0x1117   :  { %v839_v13 = vpop.f32.mrf.mxu1 }
0x1118   :  { %v842_v14 = vadd.f32 %v839_v13, %v269_v12  ;;  %v1340_v38 = vmul.f32 -1.442695, %v711_v37 }
0x111a   :  { %v1346_v27 = vmul.f32 -1.442695, %v842_v14 }
0x111c   :  { %1420 = vpow2.f32 %v1346_v27 }
0x1122   :  { %v1421_v4 = vpop.eup %1420 }
0x1123   :  { %v846_v15 = vadd.f32 1.0, %v1421_v4 }
0x1125   :  { %1422 = vrcp.f32 %v846_v15  ;;  %v858_v18 = vand.u32 2147483648, %v846_v15  ;;  %v856_v19 = vand.u32 2147483647, %v846_v15  ;;  %vm852_vm6 = vweird.f32 %v846_v15 }
0x1126   :  { %1424 = vpow2.f32 %v1340_v38 }
0x1127   :  { %v859_v33 = vor.u32 1.1754944e-38, %v858_v18  ;;  %vm857_vm8 = vcmp.eq.f32.partialorder %v856_v19, 8.507059e+37 }
0x112b   :  { %v1423_v16 = vpop.eup %1422 }
0x112c   :  { %v848_v29 = vmul.f32 %v1423_v16, %v846_v15  ;;  %vm853_vm0 = vweird.f32 %v1423_v16  ;;  %v1425_v39 = vpop.eup %1424 }
0x112d   :  { %vm854_vm7 = vmor %vm852_vm6, %vm853_vm0  ;;  %v715_v40 = vadd.f32 1.0, %v1425_v39 }
0x112e   :  { %v849_v17 = vsub.f32 1.0, %v848_v29 }
0x112f   :  { %1426 = vrcp.f32 %v715_v40  ;;  %v727_v48 = vand.u32 2147483648, %v715_v40  ;;  %vm721_vm10 = vweird.f32 %v715_v40  ;;  %v725_v49 = vand.u32 2147483647, %v715_v40 }
0x1130   :  { %v850_v31 = vmul.f32 %v1423_v16, %v849_v17 }
0x1131   :  { %v728_v2 = vor.u32 1.1754944e-38, %v727_v48  ;;  %vm726_vm12 = vcmp.eq.f32.partialorder %v725_v49, 8.507059e+37 }
0x1132   :  { %v851_v20 = vadd.f32 %v1423_v16, %v850_v31 }
0x1134   :  { %v855_v21 = vsel %vm854_vm7, %v1423_v16, %v851_v20 }
0x1135   :  { %v860_v42 = vsel %vm857_vm8, %v859_v33, %v855_v21  ;;  %v1427_v41 = vpop.eup %1426 }
0x1136   :  { %v862_v23 = vmul.f32 2.0, %v860_v42  ;;  %v717_v43 = vmul.f32 %v1427_v41, %v715_v40  ;;  %vm722_vm9 = vweird.f32 %v1427_v41  ;;  %v864_v28 = vmul.f32 %v860_v42, %v1727_v30 }
0x1137   :  { %vm723_vm11 = vmor %vm721_vm10, %vm722_vm9  ;;  %v353_v30 = vadd.f32 %v1705_v63, %v1680_v10 }
0x1138   :  { %v1347_v24 = vadd.f32 -1.0, %v862_v23  ;;  %v718_v44 = vsub.f32 1.0, %v717_v43 }
0x113a   :  { %866 = vrot.lane.b32.xlu2 %v1347_v24, %s1468_s1  ;;  %v719_v46 = vmul.f32 %v1427_v41, %v718_v44 }
0x113c   :  { %v720_v47 = vadd.f32 %v1427_v41, %v719_v46  ;;  %v437_v46 = vadd.f32 %v1705_v63, %v1697_v45 }
0x113e   :  { %v724_v50 = vsel %vm723_vm11, %v1427_v41, %v720_v47 }
0x113f   :  { %v729_v53 = vsel %vm726_vm12, %v728_v2, %v724_v50 }
0x1140   :  { %v731_v26 = vmul.f32 2.0, %v729_v53  ;;  %v733_v31 = vmul.f32 %v729_v53, %v1732_v58 }
0x1142   :  { %v1341_v54 = vadd.f32 -1.0, %v731_v26 }
0x1194   :  { %v867_v51 = vpop.permute.xlu2 %866 }
0x1195   :  { %v869_v52 = vmul.f32 %v867_v51, %v860_v42 }
0x1197   :  { %871 = vrot.lane.b32.xlu0 %v869_v52, %s1469_s3 }
0x119f   :  { %735 = vrot.lane.b32.xlu0 %v1341_v54, %s1468_s1 }
0x1209   :  { %v872_v55 = vpop.permute.xlu0 %871 }
0x120a   :  { %v874_v32 = vadd.f32 %v872_v55, %v864_v28 }
0x120c   :  { %1428 = vtanh.f32 %v874_v32 }
0x1211   :  { %v736_v60 = vpop.permute.xlu0 %735 }
0x1212   :  { %v1429_v56 = vpop.eup %1428  ;;  %v738_v61 = vmul.f32 %v736_v60, %v729_v53 }
0x1213   :  { %877 = vrot.lane.b32.xlu1 %v1429_v56, %s1468_s1 }
0x1285   :  { %v878_v57 = vpop.permute.xlu1 %877 }
0x1286   :  { %v880_v59 = vmul.f32 %v878_v57, %v860_v42 }
0x1288   :  { %882 = vrot.lane.b32.xlu2 %v880_v59, %s1469_s3 }
0x1290   :  { %740 = vrot.lane.b32.xlu2 %v738_v61, %s1469_s3 }
0x12e2   :  { %v883_v62 = vpop.permute.xlu2 %882 }
0x12e3   :  { %1348 = vmatmul.msk.f32.vlgmr.msrb.gmra.mxu2 %vm164_vm5, %v883_v62 }
0x12ea   :  { %v741_v18 = vpop.permute.xlu2 %740 }
0x12eb   :  { %v743_v33 = vadd.f32 %v741_v18, %v733_v31 }
0x1366   :  { %v903_v0 = vpop.f32.mrf.mxu2 }
0x1367   :  { %v906_v5 = vadd.f32 %v903_v0, %v353_v30 }
0x1369   :  { %v1349_v8 = vmul.f32 -1.442695, %v906_v5  ;;  %v521_v5 = vadd.f32 %v1705_v63, %v1721_v22 }
0x136b   :  { %1430 = vpow2.f32 %v1349_v8 }
0x1371   :  { %v1431_v9 = vpop.eup %1430 }
0x1372   :  { %v910_v12 = vadd.f32 1.0, %v1431_v9 }
0x1374   :  { %1432 = vrcp.f32 %v910_v12  ;;  %v922_v4 = vand.u32 2147483648, %v910_v12  ;;  %v920_v16 = vand.u32 2147483647, %v910_v12  ;;  %vm916_vm14 = vweird.f32 %v910_v12 }
0x1375   :  { %1434 = vtanh.f32 %v743_v33 }
0x1376   :  { %v923_v17 = vor.u32 1.1754944e-38, %v922_v4  ;;  %vm921_vm1 = vcmp.eq.f32.partialorder %v920_v16, 8.507059e+37 }
0x137a   :  { %v1433_v13 = vpop.eup %1432 }
0x137b   :  { %v912_v14 = vmul.f32 %v1433_v13, %v910_v12  ;;  %vm917_vm13 = vweird.f32 %v1433_v13  ;;  %v1435_v42 = vpop.eup %1434 }
0x137c   :  { %vm918_vm15 = vmor %vm916_vm14, %vm917_vm13 }
0x137d   :  { %v913_v27 = vsub.f32 1.0, %v912_v14 }
0x137f   :  { %v914_v15 = vmul.f32 %v1433_v13, %v913_v27 }
0x1381   :  { %v915_v29 = vadd.f32 %v1433_v13, %v914_v15 }
0x1383   :  { %v919_v10 = vsel %vm918_vm15, %v1433_v13, %v915_v29 }
0x1384   :  { %v924_v19 = vsel %vm921_vm1, %v923_v17, %v919_v10 }
0x1385   :  { %v926_v20 = vmul.f32 2.0, %v924_v19  ;;  %v928_v36 = vmul.f32 %v924_v19, %v874_v32 }
0x1387   :  { %v1350_v21 = vadd.f32 -1.0, %v926_v20 }
0x1389   :  { %930 = vrot.lane.b32.xlu1 %v1350_v21, %s1468_s1 }
0x1391   :  { %746 = vrot.lane.b32.xlu1 %v1435_v42, %s1468_s1 }
0x13fb   :  { %v931_v23 = vpop.permute.xlu1 %930 }
0x13fc   :  { %v933_v24 = vmul.f32 %v931_v23, %v924_v19 }
0x13fe   :  { %935 = vrot.lane.b32.xlu0 %v933_v24, %s1469_s3 }
0x1403   :  { %v747_v34 = vpop.permute.xlu1 %746 }
0x1404   :  { %v749_v35 = vmul.f32 %v747_v34, %v729_v53 }
0x1406   :  { %751 = vrot.lane.b32.xlu0 %v749_v35, %s1469_s3 }
0x1470   :  { %v936_v58 = vpop.permute.xlu0 %935 }
0x1471   :  { %v938_v37 = vadd.f32 %v936_v58, %v928_v36 }
0x1473   :  { %1436 = vtanh.f32 %v938_v37 }
0x1478   :  { %v752_v38 = vpop.permute.xlu0 %751 }
0x1479   :  { %v1437_v39 = vpop.eup %1436  ;;  %1342 = vmatmul.msk.f32.vlgmr.msra.gmra.mxu3 %vm164_vm5, %v752_v38 }
0x147a   :  { %941 = vrot.lane.b32.xlu2 %v1437_v39, %s1468_s1  ;;  %1154 = vmatpush.msra.mxu3 %v1741_v1 }
0x147c   :  { %1155 = vmatpush.msra.mxu3 %v1746_v3 }
0x147e   :  { %1156 = vmatpush.msra.mxu3 %v1756_v6 }
0x1480   :  { %1157 = vmatpush.msra.mxu3 %v1764_v7 }
0x14d4   :  { %v942_v40 = vpop.permute.xlu2 %941 }
0x14d5   :  { %v944_v41 = vmul.f32 %v942_v40, %v924_v19 }
0x14d7   :  { %946 = vrot.lane.b32.xlu1 %v944_v41, %s1469_s3 }
0x14fc   :  { %v1819_v44 = vpop.f32.mrf.mxu3 }
0x1549   :  { %v947_v43 = vpop.permute.xlu1 %946 }
0x154a   :  { %1351 = vmatmul.msk.f32.vlgmr.msrb.gmra.mxu3 %vm164_vm5, %v947_v43 }
0x15cd   :  { %v967_v47 = vpop.f32.mrf.mxu3 }
0x15ce   :  { %v970_v1 = vadd.f32 %v967_v47, %v437_v46 }
0x15d0   :  { %v1352_v48 = vmul.f32 -1.442695, %v970_v1 }
0x15d2   :  { %1438 = vpow2.f32 %v1352_v48 }
0x15d8   :  { %v1439_v3 = vpop.eup %1438 }
0x15d9   :  { %v974_v6 = vadd.f32 1.0, %v1439_v3 }
0x15db   :  { %1440 = vrcp.f32 %v974_v6  ;;  %v986_v51 = vand.u32 2147483648, %v974_v6  ;;  %v984_v52 = vand.u32 2147483647, %v974_v6  ;;  %vm980_vm3 = vweird.f32 %v974_v6 }
0x15dd   :  { %v987_v26 = vor.u32 1.1754944e-38, %v986_v51  ;;  %vm985_vm0 = vcmp.eq.f32.partialorder %v984_v52, 8.507059e+37 }
0x15e1   :  { %v1441_v7 = vpop.eup %1440 }
0x15e2   :  { %v976_v49 = vmul.f32 %v1441_v7, %v974_v6  ;;  %vm981_vm2 = vweird.f32 %v1441_v7 }
0x15e3   :  { %vm982_vm4 = vmor %vm980_vm3, %vm981_vm2 }
0x15e4   :  { %v977_v50 = vsub.f32 1.0, %v976_v49 }
0x15e6   :  { %v978_v2 = vmul.f32 %v1441_v7, %v977_v50 }
0x15e8   :  { %v979_v53 = vadd.f32 %v1441_v7, %v978_v2 }
0x15ea   :  { %v983_v54 = vsel %vm982_vm4, %v1441_v7, %v979_v53 }
0x15eb   :  { %v988_v45 = vsel %vm985_vm0, %v987_v26, %v983_v54 }
0x15ec   :  { %v990_v28 = vmul.f32 2.0, %v988_v45  ;;  %v992_v57 = vmul.f32 %v988_v45, %v938_v37  ;;  %v605_v37 = vadd.f32 %v1705_v63, %v1794_v25 }
0x15ee   :  { %v1353_v55 = vadd.f32 -1.0, %v990_v28 }
0x15f0   :  { %994 = vrot.lane.b32.xlu2 %v1353_v55, %s1468_s1 }
0x164a   :  { %v995_v32 = vpop.permute.xlu2 %994 }
0x164b   :  { %v997_v56 = vmul.f32 %v995_v32, %v988_v45 }
0x164d   :  { %999 = vrot.lane.b32.xlu0 %v997_v56, %s1469_s3 }
0x16bf   :  { %v1000_v59 = vpop.permute.xlu0 %999 }
0x16c0   :  { %v1002_v60 = vadd.f32 %v1000_v59, %v992_v57  ;;  %v689_v57 = vadd.f32 %v1705_v63, %v1789_v11 }
0x16c2   :  { %1442 = vtanh.f32 %v1002_v60 }
0x16c8   :  { %v1443_v61 = vpop.eup %1442 }
0x16c9   :  { %1005 = vrot.lane.b32.xlu1 %v1443_v61, %s1468_s1 }
0x173b   :  { %v1006_v62 = vpop.permute.xlu1 %1005 }
0x173c   :  { %v1008_v30 = vmul.f32 %v1006_v62, %v988_v45 }
0x173e   :  { %1010 = vrot.lane.b32.xlu2 %v1008_v30, %s1469_s3 }
0x1798   :  { %v1011_v0 = vpop.permute.xlu2 %1010 }
0x1799   :  { %1354 = vmatmul.msk.f32.vlgmr.msra.gmra.mxu1 %vm164_vm5, %v1011_v0 }
0x1816   :  { %v1031_v8 = vpop.f32.mrf.mxu1 }
0x1817   :  { %v1034_v9 = vadd.f32 %v1031_v8, %v521_v5 }
0x1819   :  { %v1355_v12 = vmul.f32 -1.442695, %v1034_v9 }
0x181b   :  { %1444 = vpow2.f32 %v1355_v12 }
0x1821   :  { %v1445_v13 = vpop.eup %1444 }
0x1822   :  { %v1038_v14 = vadd.f32 1.0, %v1445_v13 }
0x1824   :  { %1446 = vrcp.f32 %v1038_v14  ;;  %v1050_v16 = vand.u32 2147483648, %v1038_v14  ;;  %v1048_v17 = vand.u32 2147483647, %v1038_v14  ;;  %vm1044_vm7 = vweird.f32 %v1038_v14 }
0x1826   :  { %v1051_v10 = vor.u32 1.1754944e-38, %v1050_v16  ;;  %vm1049_vm9 = vcmp.eq.f32.partialorder %v1048_v17, 8.507059e+37 }
0x182a   :  { %v1447_v27 = vpop.eup %1446 }
0x182b   :  { %v1040_v4 = vmul.f32 %v1447_v27, %v1038_v14  ;;  %vm1045_vm6 = vweird.f32 %v1447_v27 }
0x182c   :  { %vm1046_vm8 = vmor %vm1044_vm7, %vm1045_vm6  ;;  %vm1298_vm7 = vcmask 31744  }
0x182d   :  { %v1041_v15 = vsub.f32 1.0, %v1040_v4 }
0x182f   :  { %v1042_v29 = vmul.f32 %v1447_v27, %v1041_v15 }
0x1831   :  { %v1043_v18 = vadd.f32 %v1447_v27, %v1042_v29 }
0x1833   :  { %v1047_v31 = vsel %vm1046_vm8, %v1447_v27, %v1043_v18 }
0x1834   :  { %v1052_v22 = vsel %vm1049_vm9, %v1051_v10, %v1047_v31 }
0x1835   :  { %v1054_v19 = vmul.f32 2.0, %v1052_v22  ;;  %v1056_v42 = vmul.f32 %v1052_v22, %v1002_v60 }
0x1837   :  { %v1356_v20 = vadd.f32 -1.0, %v1054_v19 }
0x1839   :  { %1058 = vrot.lane.b32.xlu0 %v1356_v20, %s1468_s1 }
0x18ab   :  { %v1059_v33 = vpop.permute.xlu0 %1058 }
0x18ac   :  { %v1061_v21 = vmul.f32 %v1059_v33, %v1052_v22 }
0x18ae   :  { %1063 = vrot.lane.b32.xlu1 %v1061_v21, %s1469_s3  ;;  %v773_v21 = vadd.f32 %v1705_v63, %v1819_v44 }
0x1920   :  { %v1064_v23 = vpop.permute.xlu1 %1063 }
0x1921   :  { %v1066_v24 = vadd.f32 %v1064_v23, %v1056_v42 }
0x1923   :  { %1448 = vtanh.f32 %v1066_v24 }
0x1929   :  { %v1449_v34 = vpop.eup %1448 }
0x192a   :  { %1069 = vrot.lane.b32.xlu2 %v1449_v34, %s1468_s1 }
0x1984   :  { %v1070_v35 = vpop.permute.xlu2 %1069 }
0x1985   :  { %v1072_v36 = vmul.f32 %v1070_v35, %v1052_v22 }
0x1987   :  { %1074 = vrot.lane.b32.xlu0 %v1072_v36, %s1469_s3 }
0x19f9   :  { %v1075_v58 = vpop.permute.xlu0 %1074 }
0x19fa   :  { %1357 = vmatmul.msk.f32.vlgmr.msra.gmra.mxu2 %vm164_vm5, %v1075_v58 }
0x1a7d   :  { %v1095_v38 = vpop.f32.mrf.mxu2 }
0x1a7e   :  { %v1098_v39 = vadd.f32 %v1095_v38, %v605_v37 }
0x1a80   :  { %v1358_v40 = vmul.f32 -1.442695, %v1098_v39 }
0x1a82   :  { %1450 = vpow2.f32 %v1358_v40 }
0x1a88   :  { %v1451_v41 = vpop.eup %1450 }
0x1a89   :  { %v1102_v43 = vadd.f32 1.0, %v1451_v41 }
0x1a8b   :  { %1452 = vrcp.f32 %v1102_v43  ;;  %v1114_v48 = vand.u32 2147483648, %v1102_v43  ;;  %v1112_v6 = vand.u32 2147483647, %v1102_v43  ;;  %vm1108_vm11 = vweird.f32 %v1102_v43 }
0x1a8d   :  { %v1115_v49 = vor.u32 1.1754944e-38, %v1114_v48  ;;  %vm1113_vm13 = vcmp.eq.f32.partialorder %v1112_v6, 8.507059e+37 }
0x1a91   :  { %v1453_v46 = vpop.eup %1452 }
0x1a92   :  { %v1104_v47 = vmul.f32 %v1453_v46, %v1102_v43  ;;  %vm1109_vm10 = vweird.f32 %v1453_v46 }
0x1a93   :  { %vm1110_vm12 = vmor %vm1108_vm11, %vm1109_vm10 }
0x1a94   :  { %v1105_v1 = vsub.f32 1.0, %v1104_v47 }
0x1a96   :  { %v1106_v3 = vmul.f32 %v1453_v46, %v1105_v1 }
0x1a98   :  { %v1107_v7 = vadd.f32 %v1453_v46, %v1106_v3 }
0x1a9a   :  { %v1111_v50 = vsel %vm1110_vm12, %v1453_v46, %v1107_v7 }
0x1a9b   :  { %v1116_v25 = vsel %vm1113_vm13, %v1115_v49, %v1111_v50  ;;  %v1268_v50 = vld [vmem:[%s1881_s7 + $0x18] sm:$0xff] }
0x1a9c   :  { %v1118_v51 = vmul.f32 2.0, %v1116_v25  ;;  %v1120_v26 = vmul.f32 %v1116_v25, %v1066_v24  ;;  %1290 = vmatpush.msrb.mxu2 %v1268_v50 }
0x1a9e   :  { %v1359_v2 = vadd.f32 -1.0, %v1118_v51  ;;  %v1266_v51 = vld [vmem:[%s1881_s7 + $0x8] sm:$0xff] }
0x1aa0   :  { %1122 = vrot.lane.b32.xlu1 %v1359_v2, %s1468_s1  ;;  %v1265_v2 = vld [vmem:[%s1881_s7] sm:$0xff] }
0x1b12   :  { %v1123_v52 = vpop.permute.xlu1 %1122 }
0x1b13   :  { %v1125_v53 = vmul.f32 %v1123_v52, %v1116_v25 }
0x1b15   :  { %1127 = vrot.lane.b32.xlu2 %v1125_v53, %s1469_s3 }
0x1b6f   :  { %v1128_v54 = vpop.permute.xlu2 %1127 }
0x1b70   :  { %v1130_v45 = vadd.f32 %v1128_v54, %v1120_v26  ;;  %v1371_v54 = vld [vmem:[%s1882_s8] ss:$0 sm:$0xff] }
0x1b72   :  { %1454 = vtanh.f32 %v1130_v45 }
0x1b78   :  { %v1455_v28 = vpop.eup %1454 }
0x1b79   :  { %1133 = vrot.lane.b32.xlu0 %v1455_v28, %s1468_s1 }
0x1beb   :  { %v1134_v55 = vpop.permute.xlu0 %1133 }
0x1bec   :  { %v1136_v32 = vmul.f32 %v1134_v55, %v1116_v25  ;;  %v1267_v25 = vld [vmem:[%s1881_s7 + $0x10] sm:$0xff] }
0x1bed   :  { %1291 = vmatpush.msrb.mxu2 %v1267_v25 }
0x1bee   :  { %1138 = vrot.lane.b32.xlu1 %v1136_v32, %s1469_s3 }
0x1bef   :  { %1292 = vmatpush.msrb.mxu2 %v1266_v51 }
0x1bf1   :  { %1293 = vmatpush.msrb.mxu2 %v1265_v2 }
0x1c60   :  { %v1139_v56 = vpop.permute.xlu1 %1138 }
0x1c61   :  { %1360 = vmatmul.msk.f32.vlgmr.msra.gmra.mxu3 %vm164_vm5, %v1139_v56 }
0x1ce4   :  { %v1159_v59 = vpop.f32.mrf.mxu3 }
0x1ce5   :  { %v1162_v60 = vadd.f32 %v1159_v59, %v689_v57 }
0x1ce7   :  { %v1361_v61 = vmul.f32 -1.442695, %v1162_v60 }
0x1ce9   :  { %1456 = vpow2.f32 %v1361_v61 }
0x1cef   :  { %v1457_v62 = vpop.eup %1456 }
0x1cf0   :  { %v1166_v30 = vadd.f32 1.0, %v1457_v62 }
0x1cf2   :  { %1458 = vrcp.f32 %v1166_v30  ;;  %v1178_v9 = vand.u32 2147483648, %v1166_v30  ;;  %v1176_v13 = vand.u32 2147483647, %v1166_v30  ;;  %vm1172_vm15 = vweird.f32 %v1166_v30 }
0x1cf4   :  { %v1179_v27 = vor.u32 1.1754944e-38, %v1178_v9  ;;  %vm1177_vm2 = vcmp.eq.f32.partialorder %v1176_v13, 8.507059e+37 }
0x1cf8   :  { %v1459_v0 = vpop.eup %1458 }
0x1cf9   :  { %v1168_v5 = vmul.f32 %v1459_v0, %v1166_v30  ;;  %vm1173_vm14 = vweird.f32 %v1459_v0 }
0x1cfa   :  { %vm1174_vm1 = vmor %vm1172_vm15, %vm1173_vm14 }
0x1cfb   :  { %v1169_v8 = vsub.f32 1.0, %v1168_v5 }
0x1cfd   :  { %v1170_v12 = vmul.f32 %v1459_v0, %v1169_v8 }
0x1cff   :  { %v1171_v14 = vadd.f32 %v1459_v0, %v1170_v12 }
0x1d01   :  { %v1175_v4 = vsel %vm1174_vm1, %v1459_v0, %v1171_v14 }
0x1d02   :  { %v1180_v11 = vsel %vm1177_vm2, %v1179_v27, %v1175_v4 }
0x1d03   :  { %v1182_v15 = vmul.f32 2.0, %v1180_v11  ;;  %v1184_v18 = vmul.f32 %v1180_v11, %v1130_v45 }
0x1d05   :  { %v1362_v16 = vadd.f32 -1.0, %v1182_v15 }
0x1d07   :  { %1186 = vrot.lane.b32.xlu2 %v1362_v16, %s1468_s1 }
0x1d61   :  { %v1187_v29 = vpop.permute.xlu2 %1186 }
0x1d62   :  { %v1189_v17 = vmul.f32 %v1187_v29, %v1180_v11 }
0x1d64   :  { %1191 = vrot.lane.b32.xlu0 %v1189_v17, %s1469_s3 }
0x1dd6   :  { %v1192_v10 = vpop.permute.xlu0 %1191 }
0x1dd7   :  { %v1194_v31 = vadd.f32 %v1192_v10, %v1184_v18 }
0x1dd9   :  { %1460 = vtanh.f32 %v1194_v31 }
0x1ddf   :  { %v1461_v22 = vpop.eup %1460 }
0x1de0   :  { %1197 = vrot.lane.b32.xlu1 %v1461_v22, %s1468_s1 }
0x1e52   :  { %v1198_v19 = vpop.permute.xlu1 %1197 }
0x1e53   :  { %v1200_v20 = vmul.f32 %v1198_v19, %v1180_v11 }
0x1e55   :  { %1202 = vrot.lane.b32.xlu2 %v1200_v20, %s1469_s3 }
0x1eaf   :  { %v1203_v33 = vpop.permute.xlu2 %1202 }
0x1eb0   :  { %1363 = vmatmul.msk.f32.vlgmr.msrb.gmra.mxu1 %vm164_vm5, %v1203_v33 }
0x1f2d   :  { %v1223_v42 = vpop.f32.mrf.mxu1 }
0x1f2e   :  { %v1226_v23 = vadd.f32 %v1223_v42, %v773_v21 }
0x1f30   :  { %v1364_v24 = vmul.f32 -1.442695, %v1226_v23 }
0x1f32   :  { %1462 = vpow2.f32 %v1364_v24 }
0x1f38   :  { %v1463_v34 = vpop.eup %1462 }
0x1f39   :  { %v1230_v35 = vadd.f32 1.0, %v1463_v34 }
0x1f3b   :  { %1464 = vrcp.f32 %v1230_v35  ;;  %v1242_v38 = vand.u32 2147483648, %v1230_v35  ;;  %v1240_v40 = vand.u32 2147483647, %v1230_v35  ;;  %vm1236_vm4 = vweird.f32 %v1230_v35 }
0x1f3d   :  { %v1243_v43 = vor.u32 1.1754944e-38, %v1242_v38  ;;  %vm1241_vm6 = vcmp.eq.f32.partialorder %v1240_v40, 8.507059e+37 }
0x1f41   :  { %v1465_v36 = vpop.eup %1464 }
0x1f42   :  { %v1232_v58 = vmul.f32 %v1465_v36, %v1230_v35  ;;  %vm1237_vm3 = vweird.f32 %v1465_v36 }
0x1f43   :  { %vm1238_vm0 = vmor %vm1236_vm4, %vm1237_vm3 }
0x1f44   :  { %v1233_v37 = vsub.f32 1.0, %v1232_v58 }
0x1f46   :  { %v1234_v39 = vmul.f32 %v1465_v36, %v1233_v37 }
0x1f48   :  { %v1235_v41 = vadd.f32 %v1465_v36, %v1234_v39 }
0x1f4a   :  { %v1239_v46 = vsel %vm1238_vm0, %v1465_v36, %v1235_v41 }
0x1f4b   :  { %v1244_v63 = vsel %vm1241_vm6, %v1243_v43, %v1239_v46 }
0x1f4c   :  { %v1246_v44 = vmul.f32 2.0, %v1244_v63  ;;  %v1248_v3 = vmul.f32 %v1244_v63, %v1194_v31 }
0x1f4e   :  { %v1365_v47 = vadd.f32 -1.0, %v1246_v44 }
0x1f50   :  { %1250 = vrot.lane.b32.xlu0 %v1365_v47, %s1468_s1 }
0x1fc2   :  { %v1251_v1 = vpop.permute.xlu0 %1250 }
0x1fc3   :  { %v1253_v48 = vmul.f32 %v1251_v1, %v1244_v63 }
0x1fc5   :  { %1255 = vrot.lane.b32.xlu1 %v1253_v48, %s1469_s3 }
0x2037   :  { %v1256_v6 = vpop.permute.xlu1 %1255 }
0x2038   :  { %v1258_v7 = vadd.f32 %v1256_v6, %v1248_v3 }
0x203a   :  { %1466 = vtanh.f32 %v1258_v7 }
0x2040   :  { %v1467_v49 = vpop.eup %1466 }
0x2041   :  { %1261 = vrot.lane.b32.xlu2 %v1467_v49, %s1468_s1 }
0x209b   :  { %v1262_v52 = vpop.permute.xlu2 %1261 }
0x209c   :  { %v1264_v53 = vmul.f32 %v1262_v52, %v1244_v63 }
0x209e   :  { %1274 = vrot.lane.b32.xlu0 %v1264_v53, %s1469_s3 }
0x2110   :  { %v1275_v26 = vpop.permute.xlu0 %1274 }
0x2111   :  { %1366 = vmatmul.msk.f32.vlgmr.msrb.gmra.mxu2 %vm164_vm5, %v1275_v26 }
0x2194   :  { %v1295_v45 = vpop.f32.mrf.mxu2 }
0x2195   :  { %v1296_v28 = vadd.f32 %v1371_v54, %v1295_v45 }
0x2197   :  { %1299 = vst.msk [vmem:[%s1883_s9] sm:$0xff] %vm1298_vm7, %v1296_v28 }

</bundles_post_ra>
